<compile_context>
chip_gen: v7x
topology: tpu7x:2x2x1
jax: 0.10.0
libtpu: 0.0.40
codegen_flags: <defaults>
</compile_context>

<pallas_src>
import jax
import jax.numpy as jnp
from jax.experimental import pallas as pl
from jax.experimental.pallas import tpu as pltpu

IN_FEATURES = 512    # base_model.fc.in_features (ResNet18-like)
HIDDEN = 1024
NUM_CLASSES = 10
CLASS_PAD = 128      # lane-dense padded class dimension
NEG_INF = -1e30


def fc_head_kernel(x_ref, w1_ref, b1_ref, w2_ref, b2_ref, out_ref):
    # x_ref: (TB, F) f32 features for this batch tile -> cast to bf16 in VMEM.
    x = x_ref[...].astype(jnp.bfloat16)

    # Linear(F, H) + ReLU  (bf16 MXU matmul, f32 accumulate).
    h = jnp.dot(x, w1_ref[...], preferred_element_type=jnp.float32) + b1_ref[...]
    h = jnp.maximum(h, 0.0)

    # Dropout(p=0.2): identity in eval/inference mode.

    # Linear(H, CLASS_PAD): bf16 MXU matmul, f32 accumulate. Padded W2 columns
    # are 0 and padded b2 lanes are -1e30 (added in f32), so padded logits are
    # ~-inf and vanish under exp below.
    logits = jnp.dot(h.astype(jnp.bfloat16), w2_ref[...],
                     preferred_element_type=jnp.float32) + b2_ref[...]

    # Numerically stable softmax over the padded (lane-dense) class axis.
    m = jnp.max(logits, axis=-1, keepdims=True)
    e = jnp.exp(logits - m)
    s = jnp.sum(e, axis=-1, keepdims=True)
    out_ref[...] = e * pl.reciprocal(s, approx=False)


def prepare_head_params(w1, b1, w2, b2, c_pad=CLASS_PAD):
    """One-time (model-load) preprocessing of the head parameters.

    w1: (F, H), b1: (1, H) or (H,), w2: (H, C), b2: (1, C) or (C,)
    Returns kernel-ready params: bf16 W1, f32 b1, bf16 zero-padded W2,
    f32 -1e30-padded b2.
    """
    H, C = w2.shape
    w1_bf = w1.astype(jnp.bfloat16)
    b1_f = jnp.asarray(b1, jnp.float32).reshape(1, -1)
    w2p = jnp.zeros((H, c_pad), jnp.bfloat16).at[:, :C].set(w2.astype(jnp.bfloat16))
    b2p = jnp.full((1, c_pad), NEG_INF, jnp.float32).at[:, :C].set(
        jnp.asarray(b2, jnp.float32).reshape(-1))
    return w1_bf, b1_f, w2p, b2p


def _pick_tb(B):
    """Batch tile: big enough to amortize per-step overhead, but keep >=2 grid
    steps when possible so v7x megacore can shard the batch axis."""
    if B >= 512:
        return 256
    if B >= 256:
        return 128
    half = (B + 1) // 2
    tb = ((max(half, 8) + 7) // 8) * 8   # sublane-aligned
    return min(tb, 128)


def cnn_head(x_feat, w1_bf, b1_f, w2p, b2p, *, num_classes=NUM_CLASSES, tb=None):
    """Pallas implementation of CNN.fc applied to backbone features.

    x_feat: (B, IN_FEATURES) f32
    w1_bf/b1_f/w2p/b2p: outputs of prepare_head_params
    returns (B, num_classes) softmax probabilities (f32).
    """
    B, F = x_feat.shape
    H = w1_bf.shape[1]
    c_pad = w2p.shape[1]

    if tb is None:
        tb = _pick_tb(B)

    # Pad batch to a multiple of the batch tile.
    bp = pl.cdiv(B, tb) * tb
    if bp != B:
        x_feat = jnp.pad(x_feat, ((0, bp - B), (0, 0)))

    flops = 2 * bp * (F * H + H * c_pad)
    bytes_accessed = (x_feat.size * 4          # f32 features in
                      + w1_bf.size * 2         # bf16 W1
                      + b1_f.size * 4
                      + w2p.size * 2           # bf16 padded W2
                      + b2p.size * 4
                      + bp * c_pad * 4)        # f32 padded output

    out = pl.pallas_call(
        fc_head_kernel,
        out_shape=jax.ShapeDtypeStruct((bp, c_pad), jnp.float32),
        grid_spec=pltpu.PrefetchScalarGridSpec(
            num_scalar_prefetch=0,
            grid=(bp // tb,),                                     # tile over batch
            in_specs=[
                pl.BlockSpec((tb, F), lambda i: (i, 0)),           # feature tile (f32)
                pl.BlockSpec((F, H), lambda i: (0, 0)),            # W1 (resident, bf16)
                pl.BlockSpec((1, H), lambda i: (0, 0)),            # b1 (f32)
                pl.BlockSpec((H, c_pad), lambda i: (0, 0)),        # W2 (resident, bf16, padded)
                pl.BlockSpec((1, c_pad), lambda i: (0, 0)),        # b2 (f32, padded -1e30)
            ],
            out_specs=pl.BlockSpec((tb, c_pad), lambda i: (i, 0)),  # lane-dense output
        ),
        compiler_params=pltpu.CompilerParams(
            dimension_semantics=("parallel",)),
        cost_estimate=pl.CostEstimate(
            flops=flops,
            transcendentals=bp * c_pad,
            bytes_accessed=bytes_accessed),
    )(x_feat, w1_bf, b1_f, w2p, b2p)

    return out[:B, :num_classes]


if __name__ == "__main__":
    key = jax.random.PRNGKey(0)
    kx, k1, k2, k3, k4 = jax.random.split(key, 5)

    B = 8  # small test batch; wrapper handles padding/tiling internally

    # Synthetic backbone features (stand-in for base_model(x).view(B, -1)).
    x_feat = jax.random.normal(kx, (B, IN_FEATURES), jnp.float32)

    # Head parameters (shapes of nn.Linear(512,1024) / nn.Linear(1024,10)).
    w1 = jax.random.normal(k1, (IN_FEATURES, HIDDEN), jnp.float32) * 0.02
    b1 = jax.random.normal(k2, (1, HIDDEN), jnp.float32) * 0.01
    w2 = jax.random.normal(k3, (HIDDEN, NUM_CLASSES), jnp.float32) * 0.02
    b2 = jax.random.normal(k4, (1, NUM_CLASSES), jnp.float32) * 0.01

    # One-time (model-load) preprocessing, hoisted out of the per-call path.
    head_params = prepare_head_params(w1, b1, w2, b2)

    out = jax.block_until_ready(cnn_head(x_feat, *head_params))

    # Pure-JAX reference using the same bf16 matmul path (f32 accumulate).
    xh = jnp.dot(x_feat.astype(jnp.bfloat16), w1.astype(jnp.bfloat16),
                 preferred_element_type=jnp.float32) + b1
    ref_h = jnp.maximum(xh, 0.0)
    ref_logits = jnp.dot(ref_h.astype(jnp.bfloat16), w2.astype(jnp.bfloat16),
                         preferred_element_type=jnp.float32) + b2
    ref = jax.nn.softmax(ref_logits, axis=1)

    assert out.shape == (B, NUM_CLASSES)
    assert jnp.allclose(out, ref, atol=2e-3, rtol=2e-3), "mismatch vs reference"
    assert jnp.allclose(jnp.sum(out, axis=1), 1.0, atol=2e-3), "softmax rows must sum to 1"

    print("KERNEL_OK")
</pallas_src>

<mosaic_0001>
module attributes {stable_mosaic.version = 11 : i64} {
  func.func @fc_head_kernel(%arg0: i32, %arg1: memref<8x512xf32, #tpu.memory_space<vmem>>, %arg2: memref<512x1024xbf16, #tpu.memory_space<vmem>>, %arg3: memref<1x1024xf32, #tpu.memory_space<vmem>>, %arg4: memref<1024x128xbf16, #tpu.memory_space<vmem>>, %arg5: memref<1x128xf32, #tpu.memory_space<vmem>>, %arg6: memref<8x128xf32, #tpu.memory_space<vmem>>) attributes {dimension_semantics = [#tpu.dimension_semantics<parallel>], iteration_bounds = array<i64: 1>, scalar_prefetch = 0 : i64, scratch_operands = 0 : i64, tpu.core_type = #tpu.core_type<tc>, window_params = [{transform_indices = @transform_0, window_bounds = array<i64: 8, 512>}, {pipeline_mode = #tpu.pipeline_mode<synchronous>, transform_indices = @transform_1, window_bounds = array<i64: 512, 1024>}, {pipeline_mode = #tpu.pipeline_mode<synchronous>, transform_indices = @transform_2, window_bounds = array<i64: 1, 1024>}, {pipeline_mode = #tpu.pipeline_mode<synchronous>, transform_indices = @transform_3, window_bounds = array<i64: 1024, 128>}, {pipeline_mode = #tpu.pipeline_mode<synchronous>, transform_indices = @transform_4, window_bounds = array<i64: 1, 128>}, {transform_indices = @transform_5, window_bounds = array<i64: 8, 128>}]} {
    %c0 = arith.constant 0 : index
    %c0_0 = arith.constant 0 : index
    %0 = vector.load %arg1[%c0, %c0_0] : memref<8x512xf32, #tpu.memory_space<vmem>>, vector<8x512xf32>
    %1 = arith.truncf %0 : vector<8x512xf32> to vector<8x512xbf16>
    %c0_1 = arith.constant 0 : index
    %c0_2 = arith.constant 0 : index
    %2 = vector.load %arg2[%c0_1, %c0_2] : memref<512x1024xbf16, #tpu.memory_space<vmem>>, vector<512x1024xbf16>
    %cst = arith.constant dense<0.000000e+00> : vector<8x1024xf32>
    %3 = tpu.matmul %1, %2, %cst {dimension_numbers = #tpu.dot_dimension_numbers<[1], [0], [0], [1], [0, 0, 1, 1], [], []>} : vector<8x512xbf16>, vector<512x1024xbf16>, vector<8x1024xf32> -> vector<8x1024xf32>
    %c0_3 = arith.constant 0 : index
    %c0_4 = arith.constant 0 : index
    %4 = vector.load %arg3[%c0_3, %c0_4] : memref<1x1024xf32, #tpu.memory_space<vmem>>, vector<1x1024xf32>
    %5 = vector.broadcast %4 : vector<1x1024xf32> to vector<8x1024xf32>
    %6 = arith.addf %3, %5 : vector<8x1024xf32>
    %cst_5 = arith.constant 0.000000e+00 : f32
    %7 = vector.broadcast %cst_5 : f32 to vector<8x1024xf32>
    %8 = arith.maximumf %6, %7 : vector<8x1024xf32>
    %9 = arith.truncf %8 : vector<8x1024xf32> to vector<8x1024xbf16>
    %c0_6 = arith.constant 0 : index
    %c0_7 = arith.constant 0 : index
    %10 = vector.load %arg4[%c0_6, %c0_7] : memref<1024x128xbf16, #tpu.memory_space<vmem>>, vector<1024x128xbf16>
    %cst_8 = arith.constant dense<0.000000e+00> : vector<8x128xf32>
    %11 = tpu.matmul %9, %10, %cst_8 {dimension_numbers = #tpu.dot_dimension_numbers<[1], [0], [0], [1], [0, 0, 1, 1], [], []>} : vector<8x1024xbf16>, vector<1024x128xbf16>, vector<8x128xf32> -> vector<8x128xf32>
    %c0_9 = arith.constant 0 : index
    %c0_10 = arith.constant 0 : index
    %12 = vector.load %arg5[%c0_9, %c0_10] : memref<1x128xf32, #tpu.memory_space<vmem>>, vector<1x128xf32>
    %13 = vector.broadcast %12 : vector<1x128xf32> to vector<8x128xf32>
    %14 = arith.addf %11, %13 : vector<8x128xf32>
    %cst_11 = arith.constant dense<0xFF800000> : vector<8xf32>
    %15 = vector.multi_reduction <maximumf>, %14, %cst_11 [1] : vector<8x128xf32> to vector<8xf32>
    %16 = vector.shape_cast %15 : vector<8xf32> to vector<8x1xf32>
    %17 = vector.broadcast %16 : vector<8x1xf32> to vector<8x128xf32>
    %18 = arith.subf %14, %17 : vector<8x128xf32>
    %19 = math.exp %18 : vector<8x128xf32>
    %cst_12 = arith.constant dense<0.000000e+00> : vector<8xf32>
    %20 = vector.multi_reduction <add>, %19, %cst_12 [1] : vector<8x128xf32> to vector<8xf32>
    %21 = vector.shape_cast %20 : vector<8xf32> to vector<8x1xf32>
    %22 = tpu.reciprocal %21 : vector<8x1xf32> -> vector<8x1xf32>
    %23 = vector.broadcast %22 : vector<8x1xf32> to vector<8x128xf32>
    %24 = arith.mulf %19, %23 : vector<8x128xf32>
    %c0_13 = arith.constant 0 : index
    %c0_14 = arith.constant 0 : index
    %25 = vector.load %arg6[%c0_13, %c0_14] : memref<8x128xf32, #tpu.memory_space<vmem>>, vector<8x128xf32>
    tpu.vector_store %arg6[%c0_13, %c0_14], %24 {strides = array<i32>} : memref<8x128xf32, #tpu.memory_space<vmem>>, vector<8x128xf32>,
    return
  }
  func.func @transform_0(%arg0: i32) -> (i32, i32) {
    %c0_i32 = arith.constant 0 : i32
    %c0_i32_0 = arith.constant 0 : i32
    return %arg0, %c0_i32 : i32, i32
  }
  func.func @transform_1(%arg0: i32) -> (i32, i32) {
    %c0_i32 = arith.constant 0 : i32
    %c0_i32_0 = arith.constant 0 : i32
    %c0_i32_1 = arith.constant 0 : i32
    return %c0_i32, %c0_i32_0 : i32, i32
  }
  func.func @transform_2(%arg0: i32) -> (i32, i32) {
    %c0_i32 = arith.constant 0 : i32
    %c0_i32_0 = arith.constant 0 : i32
    %c0_i32_1 = arith.constant 0 : i32
    return %c0_i32, %c0_i32_0 : i32, i32
  }
  func.func @transform_3(%arg0: i32) -> (i32, i32) {
    %c0_i32 = arith.constant 0 : i32
    %c0_i32_0 = arith.constant 0 : i32
    %c0_i32_1 = arith.constant 0 : i32
    return %c0_i32, %c0_i32_0 : i32, i32
  }
  func.func @transform_4(%arg0: i32) -> (i32, i32) {
    %c0_i32 = arith.constant 0 : i32
    %c0_i32_0 = arith.constant 0 : i32
    %c0_i32_1 = arith.constant 0 : i32
    return %c0_i32, %c0_i32_0 : i32, i32
  }
  func.func @transform_5(%arg0: i32) -> (i32, i32) {
    %c0_i32 = arith.constant 0 : i32
    %c0_i32_0 = arith.constant 0 : i32
    return %arg0, %c0_i32 : i32, i32
  }
}

</mosaic_0001>

<bundles_post_ra>
// kernel: tpu_custom_call.1
= control target key start
LH: loop header
LB: loop body
LE: loop exit
PB: predicated region body
PF: predicated region fallthrough
CT: control target
= control target key end

     0   :  { %10 = vsyncpa [#allocation3], 0  ;;  %s3483_s0 = inlined_call_operand.hbm [shape: f32[8,512], index: 0, kind: input, shape index: {}]   ;;  %s3484_s1 = inlined_call_operand.hbm [shape: bf16[512,1024], index: 1, kind: input, shape index: {}]   ;;  %s3485_s2 = inlined_call_operand.hbm [shape: f32[1,1024], index: 2, kind: input, shape index: {}]   ;;  %s3486_s3 = inlined_call_operand.hbm [shape: bf16[1024,128], index: 3, kind: input, shape index: {}]   ;;  %s3487_s4 = inlined_call_operand.vmem [shape: f32[1,128], index: 4, kind: input, shape index: {}]   ;;  %s3488_s5 = inlined_call_operand.hbm [shape: f32[8,128], index: 5, kind: output, shape index: {}]  }
   0x1   :  { %11 = vsyncpa [#allocation6], 0 }
   0x2   :  { %12 = vsyncpa [#allocation9], 0 }
   0x3   :  { %13 = vsyncpa [#allocation4], 0  ;;  %s3337_s18 = smov [#allocation5]   ;;  %s3219_s22 = scalar_lea.hbm %s3484_s1, 32768 }
   0x4   :  { %s29_s19 = sshll.u32 %s3337_s18, 4  ;;  %p3220_p0 = scmp.ne.s32.totalorder %s3484_s1, %s3219_s22  ;;  %s30_s19 = int_to_ptr.vmem [resolvable:$true] %s29_s19 }
   0x5   :  { %p3223_p1 = scmp.lt.u32.totalorder %s3219_s22, %s3484_s1 }
   0x7   :  { %p3225_p2 = pnand %p3223_p1, %p3220_p0 }
   0x9   :  { %3228 = shalt.err (!%p3225_p2)
}
   0xa   :  { %s3229_s27 = scalar_lea.vmem %s30_s19, 32768  ;;  %p3234_p4 = scmp.lt.s32.totalorder %s30_s19, %s30_s19 }
   0xb   :  { %p3230_p3 = scmp.ne.s32.totalorder %s30_s19, %s3229_s27  ;;  %p3235_p5 = scmp.lt.s32.totalorder %s3229_s27, %s3229_s27 }
   0xd   :  { %p3236_p6 = por %p3235_p5, %p3234_p4 }
   0xf   :  { %p3237_p7 = pnand %p3236_p6, %p3230_p3 }
  0x11   :  { %3240 = shalt.err (!%p3237_p7)
}
  0x12   :  { %s3338_s28 = smov 512   ;;  %s3339_s29 = smov 32  }
  0x13   :  { %35 = dma.hbm_to_vmem [thread:$0]  %s3484_s1, 32768, %s30_s19, [#allocation6], %s3338_s28, %s3338_s28, %s3339_s29  }
  0x14   :  { %s3340_s7 = smov [#allocation2]   ;;  %s3341_s9 = smov [#allocation7]  }
  0x15   :  { %s20_s8 = sshll.u32 %s3340_s7, 4  ;;  %s42_s10 = sshll.u32 %s3341_s9, 4  ;;  %s21_s8 = int_to_ptr.vmem [resolvable:$true] %s20_s8  ;;  %s43_s10 = int_to_ptr.vmem [resolvable:$true] %s42_s10 }
  0x16   :  { %s3241_s13 = scalar_lea.hbm %s3483_s0, 512 }
  0x17   :  { %p3242_p8 = scmp.ne.s32.totalorder %s3483_s0, %s3241_s13  ;;  %p3245_p9 = scmp.lt.u32.totalorder %s3241_s13, %s3483_s0 }
  0x19   :  { %p3247_p10 = pnand %p3245_p9, %p3242_p8 }
  0x1b   :  { %3250 = shalt.err (!%p3247_p10)
}
  0x1c   :  { %s3251_s1 = scalar_lea.vmem %s21_s8, 512  ;;  %p3256_p12 = scmp.lt.s32.totalorder %s21_s8, %s21_s8 }
  0x1d   :  { %p3252_p11 = scmp.ne.s32.totalorder %s21_s8, %s3251_s1  ;;  %p3257_p13 = scmp.lt.s32.totalorder %s3251_s1, %s3251_s1 }
  0x1f   :  { %p3258_p0 = por %p3257_p13, %p3256_p12 }
  0x21   :  { %p3259_p1 = pnand %p3258_p0, %p3252_p11 }
  0x23   :  { %3262 = shalt.err (!%p3259_p1)
}
  0x24   :  { %23 = dma.hbm_to_vmem [thread:$0]  %s3483_s0, 512, %s21_s8, [#allocation3]  }
  0x25   :  { %s3263_s22 = scalar_lea.hbm %s3485_s2, 128 }
  0x26   :  { %p3264_p2 = scmp.ne.s32.totalorder %s3485_s2, %s3263_s22  ;;  %p3267_p3 = scmp.lt.u32.totalorder %s3263_s22, %s3485_s2 }
  0x28   :  { %p3269_p4 = pnand %p3267_p3, %p3264_p2 }
  0x2a   :  { %3272 = shalt.err (!%p3269_p4)
}
  0x2b   :  { %s3273_s27 = scalar_lea.vmem %s43_s10, 128  ;;  %p3278_p6 = scmp.lt.s32.totalorder %s43_s10, %s43_s10 }
  0x2c   :  { %p3274_p5 = scmp.ne.s32.totalorder %s43_s10, %s3273_s27  ;;  %p3279_p7 = scmp.lt.s32.totalorder %s3273_s27, %s3273_s27 }
  0x2e   :  { %p3280_p8 = por %p3279_p7, %p3278_p6 }
  0x30   :  { %p3281_p9 = pnand %p3280_p8, %p3274_p5 }
  0x32   :  { %3284 = shalt.err (!%p3281_p9)
}
  0x33   :  { %45 = dma.hbm_to_vmem [thread:$0]  %s3485_s2, 128, %s43_s10, [#allocation6]  }
  0x34   :  { %s3342_s29 = smov [#allocation8]   ;;  %s3285_s8 = scalar_lea.hbm %s3486_s3, 8192 }
  0x35   :  { %s51_s30 = sshll.u32 %s3342_s29, 4  ;;  %p3286_p10 = scmp.ne.s32.totalorder %s3486_s3, %s3285_s8  ;;  %s52_s30 = int_to_ptr.vmem [resolvable:$true] %s51_s30 }
  0x36   :  { %p3289_p11 = scmp.lt.u32.totalorder %s3285_s8, %s3486_s3 }
  0x38   :  { %p3291_p12 = pnand %p3289_p11, %p3286_p10 }
  0x3a   :  { %3294 = shalt.err (!%p3291_p12)
}
  0x3b   :  { %s3295_s14 = scalar_lea.vmem %s52_s30, 8192  ;;  %p3300_p0 = scmp.lt.s32.totalorder %s52_s30, %s52_s30 }
  0x3c   :  { %p3296_p13 = scmp.ne.s32.totalorder %s52_s30, %s3295_s14  ;;  %p3301_p1 = scmp.lt.s32.totalorder %s3295_s14, %s3295_s14 }
  0x3e   :  { %p3302_p2 = por %p3301_p1, %p3300_p0 }
  0x40   :  { %p3303_p3 = pnand %p3302_p2, %p3296_p13 }
  0x42   :  { %3306 = shalt.err (!%p3303_p3)
}
  0x43   :  { %s3343_s2 = smov 64   ;;  %s3344_s10 = smov 4  }
  0x44   :  { %57 = dma.hbm_to_vmem [thread:$0]  %s3486_s3, 8192, %s52_s30, [#allocation9], %s3343_s2, %s3343_s2, %s3344_s10  }
  0x45   :  { %3329 = dma.done.wait [#allocation3], 512  }
  0x46   :  { %3330 = vsyncadd [#allocation3], 4294966784 }
  0x47   :  { %3331 = dma.done.wait [#allocation6], 32896  }
  0x48   :  { %3332 = vsyncadd [#allocation6], 4294934400 }
  0x49   :  { %3333 = dma.done.wait [#allocation9], 8192  }
  0x4a   :  { %3334 = vsyncadd [#allocation9], 4294959104  ;;  %v81_v0 = vld [vmem:[#allocation5] sm:$0xff]  ;;  %v82_v2 = vld [vmem:[#allocation5 + $0x8] sm:$0xff] }
  0x4b   :  { %v85_v1 = vld [vmem:[#allocation5 + $0x20] sm:$0xff]  ;;  %v86_v4 = vld [vmem:[#allocation5 + $0x28] sm:$0xff] }
  0x4c   :  { %v2710_v3 = vcombine.high %v81_v0, %v85_v1  ;;  %v2709_v5 = vcombine.low %v81_v0, %v85_v1  ;;  %v89_v6 = vld [vmem:[#allocation5 + $0x40] sm:$0xff]  ;;  %v2712_v8 = vcombine.high %v82_v2, %v86_v4  ;;  %v2711_v9 = vcombine.low %v82_v2, %v86_v4  ;;  %v90_v11 = vld [vmem:[#allocation5 + $0x48] sm:$0xff] }
  0x4d   :  { %v93_v7 = vld [vmem:[#allocation5 + $0x60] sm:$0xff]  ;;  %v94_v12 = vld [vmem:[#allocation5 + $0x68] sm:$0xff] }
  0x4e   :  { %v2718_v10 = vcombine.high %v89_v6, %v93_v7  ;;  %v97_v13 = vld [vmem:[#allocation5 + $0x80] sm:$0xff]  ;;  %1659 = vmatprep.subr.bf16.mxu0 %v2710_v3  ;;  %v2720_v14 = vcombine.high %v90_v11, %v94_v12  ;;  %v98_v16 = vld [vmem:[#allocation5 + $0x88] sm:$0xff]  ;;  %1741 = vmatprep.subr.bf16.mxu1 %v2712_v8  ;;  %v2717_v18 = vcombine.low %v89_v6, %v93_v7 }
  0x4f   :  { %v101_v15 = vld [vmem:[#allocation5 + $0xa0] sm:$0xff]  ;;  %v102_v17 = vld [vmem:[#allocation5 + $0xa8] sm:$0xff]  ;;  %1660 = vmatpush1.bf16.msra.mxu0 %v2709_v5  ;;  %1742 = vmatpush1.bf16.msra.mxu1 %v2711_v9  ;;  %v2719_v19 = vcombine.low %v90_v11, %v94_v12 }
  0x50   :  { %1661 = vmatprep.subr.bf16.mxu0 %v2718_v10  ;;  %v2726_v20 = vcombine.high %v97_v13, %v101_v15  ;;  %1743 = vmatprep.subr.bf16.mxu1 %v2720_v14  ;;  %v2728_v21 = vcombine.high %v98_v16, %v102_v17  ;;  %v105_v22 = vld [vmem:[#allocation5 + $0xc0] sm:$0xff]  ;;  %v106_v24 = vld [vmem:[#allocation5 + $0xc8] sm:$0xff]  ;;  %v2725_v26 = vcombine.low %v97_v13, %v101_v15 }
  0x51   :  { %v109_v23 = vld [vmem:[#allocation5 + $0xe0] sm:$0xff]  ;;  %v110_v25 = vld [vmem:[#allocation5 + $0xe8] sm:$0xff]  ;;  %v2727_v27 = vcombine.low %v98_v16, %v102_v17 }
  0x52   :  { %v2734_v28 = vcombine.high %v105_v22, %v109_v23  ;;  %v2736_v29 = vcombine.high %v106_v24, %v110_v25  ;;  %v113_v30 = vld [vmem:[#allocation5 + $0x100] sm:$0xff]  ;;  %v114_v32 = vld [vmem:[#allocation5 + $0x108] sm:$0xff]  ;;  %v2733_v34 = vcombine.low %v105_v22, %v109_v23  ;;  %v2735_v35 = vcombine.low %v106_v24, %v110_v25 }
  0x53   :  { %1662 = vmatpush1.bf16.msra.mxu0 %v2717_v18  ;;  %1744 = vmatpush1.bf16.msra.mxu1 %v2719_v19  ;;  %v117_v31 = vld [vmem:[#allocation5 + $0x120] sm:$0xff]  ;;  %v118_v33 = vld [vmem:[#allocation5 + $0x128] sm:$0xff] }
  0x54   :  { %1663 = vmatprep.subr.bf16.mxu0 %v2726_v20  ;;  %1745 = vmatprep.subr.bf16.mxu1 %v2728_v21  ;;  %v2742_v36 = vcombine.high %v113_v30, %v117_v31  ;;  %v2744_v37 = vcombine.high %v114_v32, %v118_v33  ;;  %v121_v38 = vld [vmem:[#allocation5 + $0x140] sm:$0xff]  ;;  %v122_v40 = vld [vmem:[#allocation5 + $0x148] sm:$0xff]  ;;  %v2741_v42 = vcombine.low %v113_v30, %v117_v31 }
  0x55   :  { %v125_v39 = vld [vmem:[#allocation5 + $0x160] sm:$0xff]  ;;  %v126_v41 = vld [vmem:[#allocation5 + $0x168] sm:$0xff]  ;;  %v2743_v43 = vcombine.low %v114_v32, %v118_v33 }
  0x56   :  { %v2750_v44 = vcombine.high %v121_v38, %v125_v39  ;;  %v2752_v45 = vcombine.high %v122_v40, %v126_v41  ;;  %v129_v46 = vld [vmem:[#allocation5 + $0x180] sm:$0xff]  ;;  %v130_v48 = vld [vmem:[#allocation5 + $0x188] sm:$0xff]  ;;  %v2749_v50 = vcombine.low %v121_v38, %v125_v39  ;;  %v2751_v51 = vcombine.low %v122_v40, %v126_v41 }
  0x57   :  { %1664 = vmatpush1.bf16.msra.mxu0 %v2725_v26  ;;  %1746 = vmatpush1.bf16.msra.mxu1 %v2727_v27  ;;  %v133_v47 = vld [vmem:[#allocation5 + $0x1a0] sm:$0xff]  ;;  %v134_v49 = vld [vmem:[#allocation5 + $0x1a8] sm:$0xff] }
  0x58   :  { %1665 = vmatprep.subr.bf16.mxu0 %v2734_v28  ;;  %1747 = vmatprep.subr.bf16.mxu1 %v2736_v29  ;;  %v2758_v52 = vcombine.high %v129_v46, %v133_v47  ;;  %v74_v53 = vld [vmem:[#allocation2 + $0x8] sm:$0xff]  ;;  %v2760_v54 = vcombine.high %v130_v48, %v134_v49  ;;  %v137_v55 = vld [vmem:[#allocation5 + $0x1c0] sm:$0xff]  ;;  %v2757_v60 = vcombine.low %v129_v46, %v133_v47 }
  0x59   :  { %v141_v56 = vld [vmem:[#allocation5 + $0x1e0] sm:$0xff]  ;;  %v3424_v57 = vpack.c.bf16 %v74_v53, %v74_v53  ;;  %v138_v58 = vld [vmem:[#allocation5 + $0x1c8] sm:$0xff]  ;;  %v2759_v61 = vcombine.low %v130_v48, %v134_v49 }
  0x5a   :  { %v142_v59 = vld [vmem:[#allocation5 + $0x1e8] sm:$0xff]  ;;  %v2766_v62 = vcombine.high %v137_v55, %v141_v56  ;;  %v145_v0 = vld [vmem:[#allocation5 + $0x200] sm:$0xff]  ;;  %v2765_v4 = vcombine.low %v137_v55, %v141_v56 }
  0x5b   :  { %1666 = vmatpush1.bf16.msra.mxu0 %v2733_v34  ;;  %1748 = vmatpush1.bf16.msra.mxu1 %v2735_v35  ;;  %v2768_v63 = vcombine.high %v138_v58, %v142_v59  ;;  %v149_v1 = vld [vmem:[#allocation5 + $0x220] sm:$0xff]  ;;  %v146_v2 = vld [vmem:[#allocation5 + $0x208] sm:$0xff]  ;;  %v2767_v5 = vcombine.low %v138_v58, %v142_v59 }
  0x5c   :  { %1667 = vmatprep.subr.bf16.mxu0 %v2742_v36  ;;  %1749 = vmatprep.subr.bf16.mxu1 %v2744_v37  ;;  %v150_v3 = vld [vmem:[#allocation5 + $0x228] sm:$0xff]  ;;  %v2774_v6 = vcombine.high %v145_v0, %v149_v1  ;;  %v153_v8 = vld [vmem:[#allocation5 + $0x240] sm:$0xff]  ;;  %v2773_v12 = vcombine.low %v145_v0, %v149_v1 }
  0x5d   :  { %1691 = vmatprep.mubr.bf16.mxu0 %v3424_v57  ;;  %1773 = vmatprep.mubr.bf16.mxu1 %v3424_v57  ;;  %v2776_v7 = vcombine.high %v146_v2, %v150_v3  ;;  %v157_v9 = vld [vmem:[#allocation5 + $0x260] sm:$0xff]  ;;  %v154_v10 = vld [vmem:[#allocation5 + $0x248] sm:$0xff]  ;;  %v2775_v13 = vcombine.low %v146_v2, %v150_v3 }
  0x5e   :  { %v158_v11 = vld [vmem:[#allocation5 + $0x268] sm:$0xff]  ;;  %v2782_v14 = vcombine.high %v153_v8, %v157_v9  ;;  %v161_v16 = vld [vmem:[#allocation5 + $0x280] sm:$0xff]  ;;  %v2781_v20 = vcombine.low %v153_v8, %v157_v9 }
  0x5f   :  { %1668 = vmatpush1.bf16.msra.mxu0 %v2741_v42  ;;  %1750 = vmatpush1.bf16.msra.mxu1 %v2743_v43  ;;  %v2784_v15 = vcombine.high %v154_v10, %v158_v11  ;;  %v165_v17 = vld [vmem:[#allocation5 + $0x2a0] sm:$0xff]  ;;  %v162_v18 = vld [vmem:[#allocation5 + $0x288] sm:$0xff]  ;;  %v2783_v21 = vcombine.low %v154_v10, %v158_v11 }
  0x60   :  { %1669 = vmatprep.subr.bf16.mxu0 %v2750_v44  ;;  %1751 = vmatprep.subr.bf16.mxu1 %v2752_v45  ;;  %v166_v19 = vld [vmem:[#allocation5 + $0x2a8] sm:$0xff]  ;;  %v2790_v22 = vcombine.high %v161_v16, %v165_v17  ;;  %v169_v24 = vld [vmem:[#allocation5 + $0x2c0] sm:$0xff]  ;;  %v2789_v28 = vcombine.low %v161_v16, %v165_v17 }
  0x61   :  { %v2792_v23 = vcombine.high %v162_v18, %v166_v19  ;;  %v173_v25 = vld [vmem:[#allocation5 + $0x2e0] sm:$0xff]  ;;  %v170_v26 = vld [vmem:[#allocation5 + $0x2c8] sm:$0xff]  ;;  %v2791_v29 = vcombine.low %v162_v18, %v166_v19 }
  0x62   :  { %v174_v27 = vld [vmem:[#allocation5 + $0x2e8] sm:$0xff]  ;;  %v2798_v30 = vcombine.high %v169_v24, %v173_v25  ;;  %v177_v32 = vld [vmem:[#allocation5 + $0x300] sm:$0xff]  ;;  %v2797_v36 = vcombine.low %v169_v24, %v173_v25 }
  0x63   :  { %1670 = vmatpush1.bf16.msra.mxu0 %v2749_v50  ;;  %1752 = vmatpush1.bf16.msra.mxu1 %v2751_v51  ;;  %v2800_v31 = vcombine.high %v170_v26, %v174_v27  ;;  %v181_v33 = vld [vmem:[#allocation5 + $0x320] sm:$0xff]  ;;  %v178_v34 = vld [vmem:[#allocation5 + $0x308] sm:$0xff]  ;;  %v2799_v37 = vcombine.low %v170_v26, %v174_v27 }
  0x64   :  { %1671 = vmatprep.subr.bf16.mxu0 %v2758_v52  ;;  %1753 = vmatprep.subr.bf16.mxu1 %v2760_v54  ;;  %v182_v35 = vld [vmem:[#allocation5 + $0x328] sm:$0xff]  ;;  %v2806_v38 = vcombine.high %v177_v32, %v181_v33  ;;  %v185_v40 = vld [vmem:[#allocation5 + $0x340] sm:$0xff]  ;;  %v2805_v44 = vcombine.low %v177_v32, %v181_v33 }
  0x65   :  { %v2808_v39 = vcombine.high %v178_v34, %v182_v35  ;;  %v189_v41 = vld [vmem:[#allocation5 + $0x360] sm:$0xff]  ;;  %v186_v42 = vld [vmem:[#allocation5 + $0x348] sm:$0xff]  ;;  %v2807_v45 = vcombine.low %v178_v34, %v182_v35 }
  0x66   :  { %v190_v43 = vld [vmem:[#allocation5 + $0x368] sm:$0xff]  ;;  %v2814_v46 = vcombine.high %v185_v40, %v189_v41  ;;  %v193_v48 = vld [vmem:[#allocation5 + $0x380] sm:$0xff]  ;;  %v2813_v52 = vcombine.low %v185_v40, %v189_v41 }
  0x67   :  { %1672 = vmatpush1.bf16.msra.mxu0 %v2757_v60  ;;  %1754 = vmatpush1.bf16.msra.mxu1 %v2759_v61  ;;  %v2816_v47 = vcombine.high %v186_v42, %v190_v43  ;;  %v197_v49 = vld [vmem:[#allocation5 + $0x3a0] sm:$0xff]  ;;  %v194_v50 = vld [vmem:[#allocation5 + $0x388] sm:$0xff]  ;;  %v2815_v53 = vcombine.low %v186_v42, %v190_v43 }
  0x68   :  { %1673 = vmatprep.subr.bf16.mxu0 %v2766_v62  ;;  %1755 = vmatprep.subr.bf16.mxu1 %v2768_v63  ;;  %v198_v51 = vld [vmem:[#allocation5 + $0x3a8] sm:$0xff]  ;;  %v2822_v54 = vcombine.high %v193_v48, %v197_v49  ;;  %v201_v56 = vld [vmem:[#allocation5 + $0x3c0] sm:$0xff]  ;;  %v2821_v61 = vcombine.low %v193_v48, %v197_v49 }
  0x69   :  { %v2824_v55 = vcombine.high %v194_v50, %v198_v51  ;;  %v205_v58 = vld [vmem:[#allocation5 + $0x3e0] sm:$0xff]  ;;  %v202_v59 = vld [vmem:[#allocation5 + $0x3c8] sm:$0xff]  ;;  %v2823_v62 = vcombine.low %v194_v50, %v198_v51 }
  0x6a   :  { %v206_v60 = vld [vmem:[#allocation5 + $0x3e8] sm:$0xff]  ;;  %v2830_v63 = vcombine.high %v201_v56, %v205_v58  ;;  %v209_v1 = vld [vmem:[#allocation5 + $0x400] sm:$0xff] }
  0x6b   :  { %1674 = vmatpush1.bf16.msra.mxu0 %v2765_v4  ;;  %1756 = vmatpush1.bf16.msra.mxu1 %v2767_v5  ;;  %v2832_v0 = vcombine.high %v202_v59, %v206_v60  ;;  %v213_v2 = vld [vmem:[#allocation5 + $0x420] sm:$0xff]  ;;  %v210_v3 = vld [vmem:[#allocation5 + $0x408] sm:$0xff]  ;;  %v2829_v5 = vcombine.low %v201_v56, %v205_v58 }
  0x6c   :  { %1675 = vmatprep.subr.bf16.mxu0 %v2774_v6  ;;  %1757 = vmatprep.subr.bf16.mxu1 %v2776_v7  ;;  %v214_v4 = vld [vmem:[#allocation5 + $0x428] sm:$0xff]  ;;  %v73_v6 = vld [vmem:[#allocation2] sm:$0xff]  ;;  %v2831_v7 = vcombine.low %v202_v59, %v206_v60  ;;  %v2838_v8 = vcombine.high %v209_v1, %v213_v2  ;;  %v2837_v16 = vcombine.low %v209_v1, %v213_v2 }
  0x6d   :  { %v2840_v9 = vcombine.high %v210_v3, %v214_v4  ;;  %v217_v10 = vld [vmem:[#allocation5 + $0x440] sm:$0xff]  ;;  %v2839_v17 = vcombine.low %v210_v3, %v214_v4  ;;  %v238_v32 = vld [vmem:[#allocation5 + $0x4e8] sm:$0xff] }
  0x6e   :  { %v221_v11 = vld [vmem:[#allocation5 + $0x460] sm:$0xff]  ;;  %v246_v40 = vld [vmem:[#allocation5 + $0x528] sm:$0xff] }
  0x6f   :  { %1676 = vmatpush1.bf16.msra.mxu0 %v2773_v12  ;;  %1758 = vmatpush1.bf16.msra.mxu1 %v2775_v13  ;;  %v3428_v12 = vpack.c.bf16 %v73_v6, %v73_v6  ;;  %v218_v13 = vld [vmem:[#allocation5 + $0x448] sm:$0xff]  ;;  %v2846_v18 = vcombine.high %v217_v10, %v221_v11  ;;  %v225_v19 = vld [vmem:[#allocation5 + $0x480] sm:$0xff]  ;;  %v2845_v25 = vcombine.low %v217_v10, %v221_v11 }
  0x70   :  { %1677 = vmatprep.subr.bf16.mxu0 %v2782_v14  ;;  %1759 = vmatprep.subr.bf16.mxu1 %v2784_v15  ;;  %v222_v14 = vld [vmem:[#allocation5 + $0x468] sm:$0xff]  ;;  %v76_v15 = vld [vmem:[#allocation2 + $0x18] sm:$0xff]  ;;  %v277_v6 = vld [vmem:[#allocation5 + $0x620] sm:$0xff] }
  0x71   :  { %v3430_v24 = vpack.c.bf16 %v76_v15, %v76_v15  ;;  %v2847_v26 = vcombine.low %v218_v13, %v222_v14  ;;  %v254_v48 = vld [vmem:[#allocation5 + $0x568] sm:$0xff]  ;;  %v285_v15 = vld [vmem:[#allocation5 + $0x660] sm:$0xff] }
  0x72   :  { %v262_v56 = vld [vmem:[#allocation5 + $0x5a8] sm:$0xff] }
  0x73   :  { %1678 = vmatpush1.bf16.msra.mxu0 %v2781_v20  ;;  %1760 = vmatpush1.bf16.msra.mxu1 %v2783_v21  ;;  %v229_v20 = vld [vmem:[#allocation5 + $0x4a0] sm:$0xff]  ;;  %v2848_v21 = vcombine.high %v218_v13, %v222_v14  ;;  %v270_v1 = vld [vmem:[#allocation5 + $0x5e8] sm:$0xff] }
  0x74   :  { %1679 = vmatprep.subr.bf16.mxu0 %v2790_v22  ;;  %1761 = vmatprep.subr.bf16.mxu1 %v2792_v23  ;;  %v226_v22 = vld [vmem:[#allocation5 + $0x488] sm:$0xff]  ;;  %v2854_v27 = vcombine.high %v225_v19, %v229_v20  ;;  %v2853_v33 = vcombine.low %v225_v19, %v229_v20  ;;  %v281_v14 = vld [vmem:[#allocation5 + $0x640] sm:$0xff] }
  0x75   :  { %v230_v23 = vld [vmem:[#allocation5 + $0x4a8] sm:$0xff] }
  0x76   :  { %v2855_v34 = vcombine.low %v226_v22, %v230_v23 }
  0x77   :  { %1680 = vmatpush1.bf16.msra.mxu0 %v2789_v28  ;;  %1762 = vmatpush1.bf16.msra.mxu1 %v2791_v29  ;;  %v233_v28 = vld [vmem:[#allocation5 + $0x4c0] sm:$0xff] }
  0x78   :  { %1681 = vmatprep.subr.bf16.mxu0 %v2798_v30  ;;  %1763 = vmatprep.subr.bf16.mxu1 %v2800_v31  ;;  %v237_v29 = vld [vmem:[#allocation5 + $0x4e0] sm:$0xff]  ;;  %v234_v30 = vld [vmem:[#allocation5 + $0x4c8] sm:$0xff]  ;;  %v2856_v31 = vcombine.high %v226_v22, %v230_v23 }
  0x79   :  { %v2862_v35 = vcombine.high %v233_v28, %v237_v29  ;;  %v2861_v41 = vcombine.low %v233_v28, %v237_v29  ;;  %v2863_v42 = vcombine.low %v234_v30, %v238_v32  ;;  %v289_v22 = vld [vmem:[#allocation5 + $0x680] sm:$0xff]  ;;  %v2909_v28 = vcombine.low %v281_v14, %v285_v15 }
  0x7a   :  { %v293_v23 = vld [vmem:[#allocation5 + $0x6a0] sm:$0xff] }
  0x7b   :  { %1682 = vmatpush1.bf16.msra.mxu0 %v2797_v36  ;;  %1764 = vmatpush1.bf16.msra.mxu1 %v2799_v37  ;;  %v241_v36 = vld [vmem:[#allocation5 + $0x500] sm:$0xff] }
  0x7c   :  { %1683 = vmatprep.subr.bf16.mxu0 %v2806_v38  ;;  %1765 = vmatprep.subr.bf16.mxu1 %v2808_v39  ;;  %v245_v37 = vld [vmem:[#allocation5 + $0x520] sm:$0xff]  ;;  %v242_v38 = vld [vmem:[#allocation5 + $0x508] sm:$0xff]  ;;  %v2864_v39 = vcombine.high %v234_v30, %v238_v32  ;;  %v2918_v30 = vcombine.high %v289_v22, %v293_v23 }
  0x7d   :  { %v2870_v43 = vcombine.high %v241_v36, %v245_v37  ;;  %v2869_v49 = vcombine.low %v241_v36, %v245_v37  ;;  %v2871_v50 = vcombine.low %v242_v38, %v246_v40  ;;  %v301_v32 = vld [vmem:[#allocation5 + $0x6e0] sm:$0xff]  ;;  %v2917_v36 = vcombine.low %v289_v22, %v293_v23  ;;  %v96_v22 = vld [vmem:[#allocation5 + $0x78] sm:$0xff] }
  0x7f   :  { %1684 = vmatpush1.bf16.msra.mxu0 %v2805_v44  ;;  %1766 = vmatpush1.bf16.msra.mxu1 %v2807_v45  ;;  %v249_v44 = vld [vmem:[#allocation5 + $0x540] sm:$0xff] }
  0x80   :  { %1685 = vmatprep.subr.bf16.mxu0 %v2814_v46  ;;  %1767 = vmatprep.subr.bf16.mxu1 %v2816_v47  ;;  %v253_v45 = vld [vmem:[#allocation5 + $0x560] sm:$0xff]  ;;  %v250_v46 = vld [vmem:[#allocation5 + $0x548] sm:$0xff]  ;;  %v2872_v47 = vcombine.high %v242_v38, %v246_v40 }
  0x81   :  { %v2878_v51 = vcombine.high %v249_v44, %v253_v45  ;;  %v2877_v58 = vcombine.low %v249_v44, %v253_v45  ;;  %v2879_v59 = vcombine.low %v250_v46, %v254_v48  ;;  %v309_v40 = vld [vmem:[#allocation5 + $0x720] sm:$0xff] }
  0x83   :  { %1686 = vmatpush1.bf16.msra.mxu0 %v2813_v52  ;;  %1768 = vmatpush1.bf16.msra.mxu1 %v2815_v53  ;;  %v257_v52 = vld [vmem:[#allocation5 + $0x580] sm:$0xff] }
  0x84   :  { %1687 = vmatprep.subr.bf16.mxu0 %v2822_v54  ;;  %1769 = vmatprep.subr.bf16.mxu1 %v2824_v55  ;;  %v261_v53 = vld [vmem:[#allocation5 + $0x5a0] sm:$0xff]  ;;  %v258_v54 = vld [vmem:[#allocation5 + $0x588] sm:$0xff]  ;;  %v2880_v55 = vcombine.high %v250_v46, %v254_v48 }
  0x85   :  { %v2886_v60 = vcombine.high %v257_v52, %v261_v53  ;;  %v2885_v2 = vcombine.low %v257_v52, %v261_v53  ;;  %v2887_v3 = vcombine.low %v258_v54, %v262_v56  ;;  %v317_v48 = vld [vmem:[#allocation5 + $0x760] sm:$0xff] }
  0x87   :  { %1688 = vmatpush1.bf16.msra.mxu0 %v2821_v61  ;;  %1770 = vmatpush1.bf16.msra.mxu1 %v2823_v62  ;;  %v265_v61 = vld [vmem:[#allocation5 + $0x5c0] sm:$0xff] }
  0x88   :  { %1689 = vmatprep.subr.bf16.mxu0 %v2830_v63  ;;  %1771 = vmatprep.subr.bf16.mxu1 %v2832_v0  ;;  %v269_v62 = vld [vmem:[#allocation5 + $0x5e0] sm:$0xff]  ;;  %v266_v63 = vld [vmem:[#allocation5 + $0x5c8] sm:$0xff]  ;;  %v2888_v0 = vcombine.high %v258_v54, %v262_v56 }
  0x89   :  { %v2894_v4 = vcombine.high %v265_v61, %v269_v62  ;;  %v2893_v10 = vcombine.low %v265_v61, %v269_v62  ;;  %v2895_v11 = vcombine.low %v266_v63, %v270_v1  ;;  %v325_v56 = vld [vmem:[#allocation5 + $0x7a0] sm:$0xff] }
  0x8b   :  { %1690 = vmatpush1.bf16.msra.mxu0 %v2829_v5  ;;  %1772 = vmatpush1.bf16.msra.mxu1 %v2831_v7  ;;  %v273_v5 = vld [vmem:[#allocation5 + $0x600] sm:$0xff]  ;;  %v274_v7 = vld [vmem:[#allocation5 + $0x608] sm:$0xff] }
  0x8c   :  { %1700 = vmatprep.subr.bf16.mxu0 %v2838_v8  ;;  %1782 = vmatprep.subr.bf16.mxu1 %v2840_v9  ;;  %v2896_v8 = vcombine.high %v266_v63, %v270_v1  ;;  %v278_v9 = vld [vmem:[#allocation5 + $0x628] sm:$0xff]  ;;  %v2902_v13 = vcombine.high %v273_v5, %v277_v6  ;;  %v2901_v19 = vcombine.low %v273_v5, %v277_v6  ;;  %v333_v1 = vld [vmem:[#allocation5 + $0x7e0] sm:$0xff] }
  0x8d   :  { %v2903_v20 = vcombine.low %v274_v7, %v278_v9 }
  0x8e   :  { %1692 = vmatmul.mubr.bf16.vlgmr.msra.gmra.mrb[0].mxu0 %v3428_v12  ;;  %1774 = vmatmul.mubr.bf16.vlgmr.msra.gmra.mrb[0].mxu1 %v3428_v12 }
  0x8f   :  { %1701 = vmatpush1.bf16.msra.mxu0 %v2837_v16  ;;  %1783 = vmatpush1.bf16.msra.mxu1 %v2839_v17  ;;  %v282_v16 = vld [vmem:[#allocation5 + $0x648] sm:$0xff]  ;;  %v2904_v17 = vcombine.high %v274_v7, %v278_v9  ;;  %v87_v9 = vld [vmem:[#allocation5 + $0x30] sm:$0xff] }
  0x90   :  { %1702 = vmatprep.subr.bf16.mxu0 %v2846_v18  ;;  %1784 = vmatprep.subr.bf16.mxu1 %v2848_v21  ;;  %v286_v18 = vld [vmem:[#allocation5 + $0x668] sm:$0xff]  ;;  %v2910_v21 = vcombine.high %v281_v14, %v285_v15  ;;  %v88_v14 = vld [vmem:[#allocation5 + $0x38] sm:$0xff] }
  0x91   :  { %1732 = vmatprep.mubr.bf16.mxu0 %v3430_v24  ;;  %1814 = vmatprep.mubr.bf16.mxu1 %v3430_v24  ;;  %v2911_v29 = vcombine.low %v282_v16, %v286_v18 }
  0x93   :  { %1703 = vmatpush1.bf16.msra.mxu0 %v2845_v25  ;;  %1785 = vmatpush1.bf16.msra.mxu1 %v2847_v26  ;;  %v290_v25 = vld [vmem:[#allocation5 + $0x688] sm:$0xff]  ;;  %v2912_v26 = vcombine.high %v282_v16, %v286_v18  ;;  %v91_v18 = vld [vmem:[#allocation5 + $0x50] sm:$0xff] }
  0x94   :  { %1704 = vmatprep.subr.bf16.mxu0 %v2854_v27  ;;  %1786 = vmatprep.subr.bf16.mxu1 %v2856_v31  ;;  %v294_v27 = vld [vmem:[#allocation5 + $0x6a8] sm:$0xff]  ;;  %v297_v31 = vld [vmem:[#allocation5 + $0x6c0] sm:$0xff] }
  0x95   :  { %v2919_v37 = vcombine.low %v290_v25, %v294_v27  ;;  %v2926_v38 = vcombine.high %v297_v31, %v301_v32  ;;  %v2925_v44 = vcombine.low %v297_v31, %v301_v32  ;;  %v100_v31 = vld [vmem:[#allocation5 + $0x98] sm:$0xff] }
  0x96   :  { %v104_v32 = vld [vmem:[#allocation5 + $0xb8] sm:$0xff] }
  0x97   :  { %1705 = vmatpush1.bf16.msra.mxu0 %v2853_v33  ;;  %1787 = vmatpush1.bf16.msra.mxu1 %v2855_v34  ;;  %v298_v33 = vld [vmem:[#allocation5 + $0x6c8] sm:$0xff]  ;;  %v2920_v34 = vcombine.high %v290_v25, %v294_v27 }
  0x98   :  { %1706 = vmatprep.subr.bf16.mxu0 %v2862_v35  ;;  %1788 = vmatprep.subr.bf16.mxu1 %v2864_v39  ;;  %v302_v35 = vld [vmem:[#allocation5 + $0x6e8] sm:$0xff]  ;;  %v305_v39 = vld [vmem:[#allocation5 + $0x700] sm:$0xff] }
  0x99   :  { %v2927_v45 = vcombine.low %v298_v33, %v302_v35  ;;  %v2934_v46 = vcombine.high %v305_v39, %v309_v40  ;;  %v2933_v52 = vcombine.low %v305_v39, %v309_v40  ;;  %v108_v39 = vld [vmem:[#allocation5 + $0xd8] sm:$0xff] }
  0x9a   :  { %v112_v40 = vld [vmem:[#allocation5 + $0xf8] sm:$0xff] }
  0x9b   :  { %1707 = vmatpush1.bf16.msra.mxu0 %v2861_v41  ;;  %1789 = vmatpush1.bf16.msra.mxu1 %v2863_v42  ;;  %v306_v41 = vld [vmem:[#allocation5 + $0x708] sm:$0xff]  ;;  %v2928_v42 = vcombine.high %v298_v33, %v302_v35 }
  0x9c   :  { %1708 = vmatprep.subr.bf16.mxu0 %v2870_v43  ;;  %1790 = vmatprep.subr.bf16.mxu1 %v2872_v47  ;;  %v310_v43 = vld [vmem:[#allocation5 + $0x728] sm:$0xff]  ;;  %v313_v47 = vld [vmem:[#allocation5 + $0x740] sm:$0xff] }
  0x9d   :  { %v2935_v53 = vcombine.low %v306_v41, %v310_v43  ;;  %v2942_v54 = vcombine.high %v313_v47, %v317_v48  ;;  %v2941_v61 = vcombine.low %v313_v47, %v317_v48  ;;  %v116_v47 = vld [vmem:[#allocation5 + $0x118] sm:$0xff] }
  0x9e   :  { %v120_v48 = vld [vmem:[#allocation5 + $0x138] sm:$0xff] }
  0x9f   :  { %1709 = vmatpush1.bf16.msra.mxu0 %v2869_v49  ;;  %1791 = vmatpush1.bf16.msra.mxu1 %v2871_v50  ;;  %v314_v49 = vld [vmem:[#allocation5 + $0x748] sm:$0xff]  ;;  %v2936_v50 = vcombine.high %v306_v41, %v310_v43 }
  0xa0   :  { %1710 = vmatprep.subr.bf16.mxu0 %v2878_v51  ;;  %1792 = vmatprep.subr.bf16.mxu1 %v2880_v55  ;;  %v318_v51 = vld [vmem:[#allocation5 + $0x768] sm:$0xff]  ;;  %v321_v55 = vld [vmem:[#allocation5 + $0x780] sm:$0xff] }
  0xa1   :  { %v2943_v62 = vcombine.low %v314_v49, %v318_v51  ;;  %v2950_v63 = vcombine.high %v321_v55, %v325_v56  ;;  %v2949_v5 = vcombine.low %v321_v55, %v325_v56  ;;  %v128_v55 = vld [vmem:[#allocation5 + $0x178] sm:$0xff] }
  0xa3   :  { %1711 = vmatpush1.bf16.msra.mxu0 %v2877_v58  ;;  %1793 = vmatpush1.bf16.msra.mxu1 %v2879_v59  ;;  %v322_v58 = vld [vmem:[#allocation5 + $0x788] sm:$0xff]  ;;  %v2944_v59 = vcombine.high %v314_v49, %v318_v51 }
  0xa4   :  { %1712 = vmatprep.subr.bf16.mxu0 %v2886_v60  ;;  %1794 = vmatprep.subr.bf16.mxu1 %v2888_v0  ;;  %v326_v60 = vld [vmem:[#allocation5 + $0x7a8] sm:$0xff]  ;;  %v329_v0 = vld [vmem:[#allocation5 + $0x7c0] sm:$0xff] }
  0xa5   :  { %v2951_v6 = vcombine.low %v322_v58, %v326_v60  ;;  %v2958_v7 = vcombine.high %v329_v0, %v333_v1  ;;  %v2957_v15 = vcombine.low %v329_v0, %v333_v1  ;;  %v136_v0 = vld [vmem:[#allocation5 + $0x1b8] sm:$0xff] }
  0xa7   :  { %1713 = vmatpush1.bf16.msra.mxu0 %v2885_v2  ;;  %1795 = vmatpush1.bf16.msra.mxu1 %v2887_v3  ;;  %v330_v2 = vld [vmem:[#allocation5 + $0x7c8] sm:$0xff]  ;;  %v2952_v3 = vcombine.high %v322_v58, %v326_v60  ;;  %v2747_v58 = vcombine.low %v116_v47, %v120_v48 }
  0xa8   :  { %1714 = vmatprep.subr.bf16.mxu0 %v2894_v4  ;;  %1796 = vmatprep.subr.bf16.mxu1 %v2896_v8  ;;  %v334_v4 = vld [vmem:[#allocation5 + $0x7e8] sm:$0xff]  ;;  %v83_v8 = vld [vmem:[#allocation5 + $0x10] sm:$0xff] }
  0xa9   :  { %v2959_v16 = vcombine.low %v330_v2, %v334_v4  ;;  %v2713_v25 = vcombine.low %v83_v8, %v87_v9 }
  0xab   :  { %1715 = vmatpush1.bf16.msra.mxu0 %v2893_v10  ;;  %1797 = vmatpush1.bf16.msra.mxu1 %v2895_v11  ;;  %v84_v10 = vld [vmem:[#allocation5 + $0x18] sm:$0xff]  ;;  %v2960_v11 = vcombine.high %v330_v2, %v334_v4 }
  0xac   :  { %1716 = vmatprep.subr.bf16.mxu0 %v2902_v13  ;;  %1798 = vmatprep.subr.bf16.mxu1 %v2904_v17  ;;  %v75_v13 = vld [vmem:[#allocation2 + $0x10] sm:$0xff]  ;;  %v2714_v17 = vcombine.high %v83_v8, %v87_v9  ;;  %v144_v8 = vld [vmem:[#allocation5 + $0x1f8] sm:$0xff] }
  0xad   :  { %v3436_v23 = vpack.c.bf16 %v75_v13, %v75_v13 }
  0xaf   :  { %1717 = vmatpush1.bf16.msra.mxu0 %v2901_v19  ;;  %1799 = vmatpush1.bf16.msra.mxu1 %v2903_v20  ;;  %v95_v19 = vld [vmem:[#allocation5 + $0x70] sm:$0xff]  ;;  %v92_v20 = vld [vmem:[#allocation5 + $0x58] sm:$0xff] }
  0xb0   :  { %1718 = vmatprep.subr.bf16.mxu0 %v2910_v21  ;;  %1800 = vmatprep.subr.bf16.mxu1 %v2912_v26  ;;  %v2716_v21 = vcombine.high %v84_v10, %v88_v14  ;;  %v2715_v26 = vcombine.low %v84_v10, %v88_v14  ;;  %v2722_v27 = vcombine.high %v91_v18, %v95_v19  ;;  %v147_v14 = vld [vmem:[#allocation5 + $0x210] sm:$0xff] }
  0xb1   :  { %v2721_v33 = vcombine.low %v91_v18, %v95_v19 }
  0xb3   :  { %1719 = vmatpush1.bf16.msra.mxu0 %v2909_v28  ;;  %1801 = vmatpush1.bf16.msra.mxu1 %v2911_v29  ;;  %v2724_v28 = vcombine.high %v92_v20, %v96_v22  ;;  %v99_v29 = vld [vmem:[#allocation5 + $0x90] sm:$0xff] }
  0xb4   :  { %1720 = vmatprep.subr.bf16.mxu0 %v2918_v30  ;;  %1802 = vmatprep.subr.bf16.mxu1 %v2920_v34  ;;  %v103_v30 = vld [vmem:[#allocation5 + $0xb0] sm:$0xff]  ;;  %v2723_v34 = vcombine.low %v92_v20, %v96_v22 }
  0xb5   :  { %v2730_v35 = vcombine.high %v99_v29, %v103_v30  ;;  %v2729_v41 = vcombine.low %v99_v29, %v103_v30  ;;  %v155_v22 = vld [vmem:[#allocation5 + $0x250] sm:$0xff] }
  0xb7   :  { %1721 = vmatpush1.bf16.msra.mxu0 %v2917_v36  ;;  %1803 = vmatpush1.bf16.msra.mxu1 %v2919_v37  ;;  %v2732_v36 = vcombine.high %v100_v31, %v104_v32  ;;  %v107_v37 = vld [vmem:[#allocation5 + $0xd0] sm:$0xff] }
  0xb8   :  { %1722 = vmatprep.subr.bf16.mxu0 %v2926_v38  ;;  %1804 = vmatprep.subr.bf16.mxu1 %v2928_v42  ;;  %v111_v38 = vld [vmem:[#allocation5 + $0xf0] sm:$0xff]  ;;  %v2731_v42 = vcombine.low %v100_v31, %v104_v32 }
  0xb9   :  { %v2738_v43 = vcombine.high %v107_v37, %v111_v38  ;;  %v2737_v49 = vcombine.low %v107_v37, %v111_v38  ;;  %v163_v32 = vld [vmem:[#allocation5 + $0x290] sm:$0xff] }
  0xbb   :  { %1723 = vmatpush1.bf16.msra.mxu0 %v2925_v44  ;;  %1805 = vmatpush1.bf16.msra.mxu1 %v2927_v45  ;;  %v2740_v44 = vcombine.high %v108_v39, %v112_v40  ;;  %v115_v45 = vld [vmem:[#allocation5 + $0x110] sm:$0xff] }
  0xbc   :  { %1724 = vmatprep.subr.bf16.mxu0 %v2934_v46  ;;  %1806 = vmatprep.subr.bf16.mxu1 %v2936_v50  ;;  %v119_v46 = vld [vmem:[#allocation5 + $0x130] sm:$0xff]  ;;  %v2739_v50 = vcombine.low %v108_v39, %v112_v40 }
  0xbd   :  { %v2746_v51 = vcombine.high %v115_v45, %v119_v46  ;;  %v2745_v56 = vcombine.low %v115_v45, %v119_v46  ;;  %v171_v40 = vld [vmem:[#allocation5 + $0x2d0] sm:$0xff] }
  0xbf   :  { %1725 = vmatpush1.bf16.msra.mxu0 %v2933_v52  ;;  %1807 = vmatpush1.bf16.msra.mxu1 %v2935_v53  ;;  %v123_v52 = vld [vmem:[#allocation5 + $0x150] sm:$0xff] }
  0xc0   :  { %1726 = vmatprep.subr.bf16.mxu0 %v2942_v54  ;;  %1808 = vmatprep.subr.bf16.mxu1 %v2944_v59  ;;  %v127_v53 = vld [vmem:[#allocation5 + $0x170] sm:$0xff]  ;;  %v124_v54 = vld [vmem:[#allocation5 + $0x158] sm:$0xff] }
  0xc1   :  { %v2754_v59 = vcombine.high %v123_v52, %v127_v53  ;;  %v2756_v60 = vcombine.high %v124_v54, %v128_v55  ;;  %v2753_v1 = vcombine.low %v123_v52, %v127_v53  ;;  %v2755_v2 = vcombine.low %v124_v54, %v128_v55  ;;  %v187_v55 = vld [vmem:[#allocation5 + $0x350] sm:$0xff] }
  0xc3   :  { %1727 = vmatpush1.bf16.msra.mxu0 %v2941_v61  ;;  %1809 = vmatpush1.bf16.msra.mxu1 %v2943_v62  ;;  %v131_v61 = vld [vmem:[#allocation5 + $0x190] sm:$0xff] }
  0xc4   :  { %1728 = vmatprep.subr.bf16.mxu0 %v2950_v63  ;;  %1810 = vmatprep.subr.bf16.mxu1 %v2952_v3  ;;  %v135_v62 = vld [vmem:[#allocation5 + $0x1b0] sm:$0xff]  ;;  %v132_v63 = vld [vmem:[#allocation5 + $0x198] sm:$0xff] }
  0xc5   :  { %v2762_v3 = vcombine.high %v131_v61, %v135_v62  ;;  %v2764_v4 = vcombine.high %v132_v63, %v136_v0  ;;  %v2761_v9 = vcombine.low %v131_v61, %v135_v62  ;;  %v2763_v10 = vcombine.low %v132_v63, %v136_v0  ;;  %v195_v0 = vld [vmem:[#allocation5 + $0x390] sm:$0xff] }
  0xc7   :  { %1729 = vmatpush1.bf16.msra.mxu0 %v2949_v5  ;;  %1811 = vmatpush1.bf16.msra.mxu1 %v2951_v6  ;;  %v139_v5 = vld [vmem:[#allocation5 + $0x1d0] sm:$0xff] }
  0xc8   :  { %1730 = vmatprep.subr.bf16.mxu0 %v2958_v7  ;;  %1812 = vmatprep.subr.bf16.mxu1 %v2960_v11  ;;  %v143_v6 = vld [vmem:[#allocation5 + $0x1f0] sm:$0xff]  ;;  %v140_v7 = vld [vmem:[#allocation5 + $0x1d8] sm:$0xff] }
  0xc9   :  { %v2770_v11 = vcombine.high %v139_v5, %v143_v6  ;;  %v2772_v13 = vcombine.high %v140_v7, %v144_v8  ;;  %v2769_v18 = vcombine.low %v139_v5, %v143_v6  ;;  %v2771_v19 = vcombine.low %v140_v7, %v144_v8  ;;  %v203_v8 = vld [vmem:[#allocation5 + $0x3d0] sm:$0xff] }
  0xcb   :  { %1731 = vmatpush1.bf16.msra.mxu0 %v2957_v15  ;;  %1813 = vmatpush1.bf16.msra.mxu1 %v2959_v16  ;;  %v151_v15 = vld [vmem:[#allocation5 + $0x230] sm:$0xff]  ;;  %v148_v16 = vld [vmem:[#allocation5 + $0x218] sm:$0xff] }
  0xcc   :  { %1823 = vmatprep.subr.bf16.mxu0 %v2714_v17  ;;  %1905 = vmatprep.subr.bf16.mxu1 %v2716_v21  ;;  %v152_v17 = vld [vmem:[#allocation5 + $0x238] sm:$0xff]  ;;  %v2778_v20 = vcombine.high %v147_v14, %v151_v15 }
  0xcd   :  { %v2780_v21 = vcombine.high %v148_v16, %v152_v17  ;;  %v2779_v29 = vcombine.low %v148_v16, %v152_v17  ;;  %v211_v17 = vld [vmem:[#allocation5 + $0x410] sm:$0xff] }
  0xce   :  { %1733 = vmatmul.mubr.bf16.vlgmr.msra.gmra.mrb[0].mxu0 %v3436_v23  ;;  %1815 = vmatmul.mubr.bf16.vlgmr.msra.gmra.mrb[0].mxu1 %v3436_v23 }
  0xcf   :  { %1824 = vmatpush1.bf16.msra.mxu0 %v2713_v25  ;;  %1906 = vmatpush1.bf16.msra.mxu1 %v2715_v26  ;;  %v159_v25 = vld [vmem:[#allocation5 + $0x270] sm:$0xff]  ;;  %v156_v26 = vld [vmem:[#allocation5 + $0x258] sm:$0xff] }
  0xd0   :  { %1825 = vmatprep.subr.bf16.mxu0 %v2722_v27  ;;  %1907 = vmatprep.subr.bf16.mxu1 %v2724_v28  ;;  %v160_v27 = vld [vmem:[#allocation5 + $0x278] sm:$0xff]  ;;  %v2777_v28 = vcombine.low %v147_v14, %v151_v15  ;;  %v2786_v30 = vcombine.high %v155_v22, %v159_v25 }
  0xd1   :  { %1855 = vmatprep.mubr.bf16.mxu0 %v3424_v57  ;;  %1937 = vmatprep.mubr.bf16.mxu1 %v3424_v57  ;;  %v2748_v57 = vcombine.high %v116_v47, %v120_v48  ;;  %v2788_v31 = vcombine.high %v156_v26, %v160_v27  ;;  %v2787_v37 = vcombine.low %v156_v26, %v160_v27  ;;  %v179_v48 = vld [vmem:[#allocation5 + $0x310] sm:$0xff] }
  0xd2   :  { %v219_v27 = vld [vmem:[#allocation5 + $0x450] sm:$0xff] }
  0xd3   :  { %1826 = vmatpush1.bf16.msra.mxu0 %v2721_v33  ;;  %1908 = vmatpush1.bf16.msra.mxu1 %v2723_v34  ;;  %v167_v33 = vld [vmem:[#allocation5 + $0x2b0] sm:$0xff]  ;;  %v164_v34 = vld [vmem:[#allocation5 + $0x298] sm:$0xff] }
  0xd4   :  { %1827 = vmatprep.subr.bf16.mxu0 %v2730_v35  ;;  %1909 = vmatprep.subr.bf16.mxu1 %v2732_v36  ;;  %v168_v35 = vld [vmem:[#allocation5 + $0x2b8] sm:$0xff]  ;;  %v2785_v36 = vcombine.low %v155_v22, %v159_v25  ;;  %v2794_v38 = vcombine.high %v163_v32, %v167_v33 }
  0xd5   :  { %v2796_v39 = vcombine.high %v164_v34, %v168_v35  ;;  %v2795_v45 = vcombine.low %v164_v34, %v168_v35  ;;  %v227_v35 = vld [vmem:[#allocation5 + $0x490] sm:$0xff] }
  0xd7   :  { %1828 = vmatpush1.bf16.msra.mxu0 %v2729_v41  ;;  %1910 = vmatpush1.bf16.msra.mxu1 %v2731_v42  ;;  %v175_v41 = vld [vmem:[#allocation5 + $0x2f0] sm:$0xff]  ;;  %v172_v42 = vld [vmem:[#allocation5 + $0x2d8] sm:$0xff] }
  0xd8   :  { %1829 = vmatprep.subr.bf16.mxu0 %v2738_v43  ;;  %1911 = vmatprep.subr.bf16.mxu1 %v2740_v44  ;;  %v176_v43 = vld [vmem:[#allocation5 + $0x2f8] sm:$0xff]  ;;  %v2793_v44 = vcombine.low %v163_v32, %v167_v33  ;;  %v2802_v46 = vcombine.high %v171_v40, %v175_v41 }
  0xd9   :  { %v2804_v47 = vcombine.high %v172_v42, %v176_v43  ;;  %v2803_v52 = vcombine.low %v172_v42, %v176_v43  ;;  %v235_v43 = vld [vmem:[#allocation5 + $0x4d0] sm:$0xff] }
  0xdb   :  { %1830 = vmatpush1.bf16.msra.mxu0 %v2737_v49  ;;  %1912 = vmatpush1.bf16.msra.mxu1 %v2739_v50  ;;  %v183_v49 = vld [vmem:[#allocation5 + $0x330] sm:$0xff]  ;;  %v180_v50 = vld [vmem:[#allocation5 + $0x318] sm:$0xff] }
  0xdc   :  { %1831 = vmatprep.subr.bf16.mxu0 %v2746_v51  ;;  %1913 = vmatprep.subr.bf16.mxu1 %v2748_v57  ;;  %v184_v51 = vld [vmem:[#allocation5 + $0x338] sm:$0xff]  ;;  %v2801_v57 = vcombine.low %v171_v40, %v175_v41  ;;  %v2810_v53 = vcombine.high %v179_v48, %v183_v49 }
  0xdd   :  { %v2812_v54 = vcombine.high %v180_v50, %v184_v51  ;;  %v2811_v61 = vcombine.low %v180_v50, %v184_v51  ;;  %v243_v50 = vld [vmem:[#allocation5 + $0x510] sm:$0xff] }
  0xde   :  { %v247_v51 = vld [vmem:[#allocation5 + $0x530] sm:$0xff] }
  0xdf   :  { %1832 = vmatpush1.bf16.msra.mxu0 %v2745_v56  ;;  %1914 = vmatpush1.bf16.msra.mxu1 %v2747_v58  ;;  %v191_v56 = vld [vmem:[#allocation5 + $0x370] sm:$0xff]  ;;  %v188_v58 = vld [vmem:[#allocation5 + $0x358] sm:$0xff] }
  0xe0   :  { %1833 = vmatprep.subr.bf16.mxu0 %v2754_v59  ;;  %1915 = vmatprep.subr.bf16.mxu1 %v2756_v60  ;;  %v192_v59 = vld [vmem:[#allocation5 + $0x378] sm:$0xff]  ;;  %v2809_v60 = vcombine.low %v179_v48, %v183_v49  ;;  %v2818_v62 = vcombine.high %v187_v55, %v191_v56 }
  0xe1   :  { %v2820_v63 = vcombine.high %v188_v58, %v192_v59  ;;  %v2819_v5 = vcombine.low %v188_v58, %v192_v59  ;;  %v255_v58 = vld [vmem:[#allocation5 + $0x570] sm:$0xff]  ;;  %v252_v59 = vld [vmem:[#allocation5 + $0x558] sm:$0xff] }
  0xe3   :  { %1834 = vmatpush1.bf16.msra.mxu0 %v2753_v1  ;;  %1916 = vmatpush1.bf16.msra.mxu1 %v2755_v2  ;;  %v199_v1 = vld [vmem:[#allocation5 + $0x3b0] sm:$0xff]  ;;  %v196_v2 = vld [vmem:[#allocation5 + $0x398] sm:$0xff] }
  0xe4   :  { %1835 = vmatprep.subr.bf16.mxu0 %v2762_v3  ;;  %1917 = vmatprep.subr.bf16.mxu1 %v2764_v4  ;;  %v200_v3 = vld [vmem:[#allocation5 + $0x3b8] sm:$0xff]  ;;  %v2817_v4 = vcombine.low %v187_v55, %v191_v56  ;;  %v2826_v6 = vcombine.high %v195_v0, %v199_v1  ;;  %v2874_v55 = vcombine.high %v243_v50, %v247_v51  ;;  %v251_v56 = vld [vmem:[#allocation5 + $0x550] sm:$0xff] }
  0xe5   :  { %v2828_v7 = vcombine.high %v196_v2, %v200_v3  ;;  %v2827_v14 = vcombine.low %v196_v2, %v200_v3  ;;  %v263_v2 = vld [vmem:[#allocation5 + $0x5b0] sm:$0xff]  ;;  %v260_v3 = vld [vmem:[#allocation5 + $0x598] sm:$0xff] }
  0xe7   :  { %1836 = vmatpush1.bf16.msra.mxu0 %v2761_v9  ;;  %1918 = vmatpush1.bf16.msra.mxu1 %v2763_v10  ;;  %v207_v9 = vld [vmem:[#allocation5 + $0x3f0] sm:$0xff]  ;;  %v204_v10 = vld [vmem:[#allocation5 + $0x3d8] sm:$0xff] }
  0xe8   :  { %1837 = vmatprep.subr.bf16.mxu0 %v2770_v11  ;;  %1919 = vmatprep.subr.bf16.mxu1 %v2772_v13  ;;  %v208_v11 = vld [vmem:[#allocation5 + $0x3f8] sm:$0xff]  ;;  %v2825_v13 = vcombine.low %v195_v0, %v199_v1  ;;  %v2834_v15 = vcombine.high %v203_v8, %v207_v9  ;;  %v259_v1 = vld [vmem:[#allocation5 + $0x590] sm:$0xff] }
  0xe9   :  { %v2836_v16 = vcombine.high %v204_v10, %v208_v11  ;;  %v2835_v22 = vcombine.low %v204_v10, %v208_v11  ;;  %v271_v10 = vld [vmem:[#allocation5 + $0x5f0] sm:$0xff]  ;;  %v268_v11 = vld [vmem:[#allocation5 + $0x5d8] sm:$0xff] }
  0xeb   :  { %1838 = vmatpush1.bf16.msra.mxu0 %v2769_v18  ;;  %1920 = vmatpush1.bf16.msra.mxu1 %v2771_v19  ;;  %v215_v18 = vld [vmem:[#allocation5 + $0x430] sm:$0xff]  ;;  %v212_v19 = vld [vmem:[#allocation5 + $0x418] sm:$0xff] }
  0xec   :  { %1839 = vmatprep.subr.bf16.mxu0 %v2778_v20  ;;  %1921 = vmatprep.subr.bf16.mxu1 %v2780_v21  ;;  %v216_v20 = vld [vmem:[#allocation5 + $0x438] sm:$0xff]  ;;  %v2833_v21 = vcombine.low %v203_v8, %v207_v9  ;;  %v2842_v25 = vcombine.high %v211_v17, %v215_v18  ;;  %v267_v9 = vld [vmem:[#allocation5 + $0x5d0] sm:$0xff] }
  0xed   :  { %v2844_v26 = vcombine.high %v212_v19, %v216_v20  ;;  %v2843_v32 = vcombine.low %v212_v19, %v216_v20  ;;  %v279_v19 = vld [vmem:[#allocation5 + $0x630] sm:$0xff]  ;;  %v276_v20 = vld [vmem:[#allocation5 + $0x618] sm:$0xff] }
  0xef   :  { %1840 = vmatpush1.bf16.msra.mxu0 %v2777_v28  ;;  %1922 = vmatpush1.bf16.msra.mxu1 %v2779_v29  ;;  %v223_v28 = vld [vmem:[#allocation5 + $0x470] sm:$0xff]  ;;  %v220_v29 = vld [vmem:[#allocation5 + $0x458] sm:$0xff] }
  0xf0   :  { %1841 = vmatprep.subr.bf16.mxu0 %v2786_v30  ;;  %1923 = vmatprep.subr.bf16.mxu1 %v2788_v31  ;;  %v224_v30 = vld [vmem:[#allocation5 + $0x478] sm:$0xff]  ;;  %v2841_v31 = vcombine.low %v211_v17, %v215_v18  ;;  %v2850_v33 = vcombine.high %v219_v27, %v223_v28  ;;  %v275_v18 = vld [vmem:[#allocation5 + $0x610] sm:$0xff] }
  0xf1   :  { %v2852_v34 = vcombine.high %v220_v29, %v224_v30  ;;  %v2851_v40 = vcombine.low %v220_v29, %v224_v30  ;;  %v287_v29 = vld [vmem:[#allocation5 + $0x670] sm:$0xff]  ;;  %v284_v30 = vld [vmem:[#allocation5 + $0x658] sm:$0xff] }
  0xf3   :  { %1842 = vmatpush1.bf16.msra.mxu0 %v2785_v36  ;;  %1924 = vmatpush1.bf16.msra.mxu1 %v2787_v37  ;;  %v231_v36 = vld [vmem:[#allocation5 + $0x4b0] sm:$0xff]  ;;  %v228_v37 = vld [vmem:[#allocation5 + $0x498] sm:$0xff] }
  0xf4   :  { %1843 = vmatprep.subr.bf16.mxu0 %v2794_v38  ;;  %1925 = vmatprep.subr.bf16.mxu1 %v2796_v39  ;;  %v232_v38 = vld [vmem:[#allocation5 + $0x4b8] sm:$0xff]  ;;  %v2849_v39 = vcombine.low %v219_v27, %v223_v28  ;;  %v2858_v41 = vcombine.high %v227_v35, %v231_v36  ;;  %v283_v28 = vld [vmem:[#allocation5 + $0x650] sm:$0xff] }
  0xf5   :  { %v2860_v42 = vcombine.high %v228_v37, %v232_v38 }
  0xf7   :  { %1844 = vmatpush1.bf16.msra.mxu0 %v2793_v44  ;;  %1926 = vmatpush1.bf16.msra.mxu1 %v2795_v45  ;;  %v239_v44 = vld [vmem:[#allocation5 + $0x4f0] sm:$0xff]  ;;  %v236_v45 = vld [vmem:[#allocation5 + $0x4d8] sm:$0xff] }
  0xf8   :  { %1845 = vmatprep.subr.bf16.mxu0 %v2802_v46  ;;  %1927 = vmatprep.subr.bf16.mxu1 %v2804_v47  ;;  %v240_v46 = vld [vmem:[#allocation5 + $0x4f8] sm:$0xff]  ;;  %v2857_v47 = vcombine.low %v227_v35, %v231_v36  ;;  %v2866_v48 = vcombine.high %v235_v43, %v239_v44  ;;  %v291_v36 = vld [vmem:[#allocation5 + $0x690] sm:$0xff] }
  0xf9   :  { %v2868_v49 = vcombine.high %v236_v45, %v240_v46 }
  0xfb   :  { %1846 = vmatpush1.bf16.msra.mxu0 %v2801_v57  ;;  %1928 = vmatpush1.bf16.msra.mxu1 %v2803_v52  ;;  %v244_v57 = vld [vmem:[#allocation5 + $0x518] sm:$0xff] }
  0xfc   :  { %1847 = vmatprep.subr.bf16.mxu0 %v2810_v53  ;;  %1929 = vmatprep.subr.bf16.mxu1 %v2812_v54  ;;  %v248_v52 = vld [vmem:[#allocation5 + $0x538] sm:$0xff]  ;;  %v2865_v53 = vcombine.low %v235_v43, %v239_v44  ;;  %v2867_v54 = vcombine.low %v236_v45, %v240_v46  ;;  %v299_v44 = vld [vmem:[#allocation5 + $0x6d0] sm:$0xff] }
  0xfd   :  { %v303_v45 = vld [vmem:[#allocation5 + $0x6f0] sm:$0xff]  ;;  %v300_v46 = vld [vmem:[#allocation5 + $0x6d8] sm:$0xff] }
  0xff   :  { %1848 = vmatpush1.bf16.msra.mxu0 %v2809_v60  ;;  %1930 = vmatpush1.bf16.msra.mxu1 %v2811_v61  ;;  %v256_v60 = vld [vmem:[#allocation5 + $0x578] sm:$0xff]  ;;  %v2873_v61 = vcombine.low %v243_v50, %v247_v51  ;;  %v307_v51 = vld [vmem:[#allocation5 + $0x710] sm:$0xff] }
 0x100   :  { %1849 = vmatprep.subr.bf16.mxu0 %v2818_v62  ;;  %1931 = vmatprep.subr.bf16.mxu1 %v2820_v63  ;;  %v2875_v62 = vcombine.low %v244_v57, %v248_v52  ;;  %v2882_v63 = vcombine.high %v251_v56, %v255_v58  ;;  %v2884_v0 = vcombine.high %v252_v59, %v256_v60 }
 0x103   :  { %1850 = vmatpush1.bf16.msra.mxu0 %v2817_v4  ;;  %1932 = vmatpush1.bf16.msra.mxu1 %v2819_v5  ;;  %v264_v4 = vld [vmem:[#allocation5 + $0x5b8] sm:$0xff]  ;;  %v2881_v5 = vcombine.low %v251_v56, %v255_v58  ;;  %v315_v58 = vld [vmem:[#allocation5 + $0x750] sm:$0xff] }
 0x104   :  { %1851 = vmatprep.subr.bf16.mxu0 %v2826_v6  ;;  %1933 = vmatprep.subr.bf16.mxu1 %v2828_v7  ;;  %v2883_v6 = vcombine.low %v252_v59, %v256_v60  ;;  %v2890_v7 = vcombine.high %v259_v1, %v263_v2  ;;  %v2892_v8 = vcombine.high %v260_v3, %v264_v4  ;;  %v319_v59 = vld [vmem:[#allocation5 + $0x770] sm:$0xff]  ;;  %v316_v60 = vld [vmem:[#allocation5 + $0x758] sm:$0xff] }
 0x107   :  { %1852 = vmatpush1.bf16.msra.mxu0 %v2825_v13  ;;  %1934 = vmatpush1.bf16.msra.mxu1 %v2827_v14  ;;  %v272_v13 = vld [vmem:[#allocation5 + $0x5f8] sm:$0xff]  ;;  %v2889_v14 = vcombine.low %v259_v1, %v263_v2  ;;  %v323_v2 = vld [vmem:[#allocation5 + $0x790] sm:$0xff] }
 0x108   :  { %1853 = vmatprep.subr.bf16.mxu0 %v2834_v15  ;;  %1935 = vmatprep.subr.bf16.mxu1 %v2836_v16  ;;  %v2891_v15 = vcombine.low %v260_v3, %v264_v4  ;;  %v2898_v16 = vcombine.high %v267_v9, %v271_v10  ;;  %v2900_v17 = vcombine.high %v268_v11, %v272_v13  ;;  %v327_v3 = vld [vmem:[#allocation5 + $0x7b0] sm:$0xff]  ;;  %v324_v4 = vld [vmem:[#allocation5 + $0x798] sm:$0xff] }
 0x10b   :  { %1854 = vmatpush1.bf16.msra.mxu0 %v2833_v21  ;;  %1936 = vmatpush1.bf16.msra.mxu1 %v2835_v22  ;;  %v280_v21 = vld [vmem:[#allocation5 + $0x638] sm:$0xff]  ;;  %v2897_v22 = vcombine.low %v267_v9, %v271_v10  ;;  %v331_v10 = vld [vmem:[#allocation5 + $0x7d0] sm:$0xff] }
 0x10c   :  { %1864 = vmatprep.subr.bf16.mxu0 %v2842_v25  ;;  %1946 = vmatprep.subr.bf16.mxu1 %v2844_v26  ;;  %v2899_v25 = vcombine.low %v268_v11, %v272_v13  ;;  %v2906_v26 = vcombine.high %v275_v18, %v279_v19  ;;  %v2908_v27 = vcombine.high %v276_v20, %v280_v21  ;;  %v335_v11 = vld [vmem:[#allocation5 + $0x7f0] sm:$0xff]  ;;  %v332_v13 = vld [vmem:[#allocation5 + $0x7d8] sm:$0xff] }
 0x10e   :  { %1856 = vmatmul.mubr.bf16.vlgmr.msra.gmra.mrb[4].mxu0 %v3428_v12  ;;  %1938 = vmatmul.mubr.bf16.vlgmr.msra.gmra.mrb[4].mxu1 %v3428_v12  ;;  %v2859_v12 = vcombine.low %v228_v37, %v232_v38  ;;  %v295_v37 = vld [vmem:[#allocation5 + $0x6b0] sm:$0xff]  ;;  %v292_v38 = vld [vmem:[#allocation5 + $0x698] sm:$0xff] }
 0x10f   :  { %1865 = vmatpush1.bf16.msra.mxu0 %v2841_v31  ;;  %1947 = vmatpush1.bf16.msra.mxu1 %v2843_v32  ;;  %v288_v31 = vld [vmem:[#allocation5 + $0x678] sm:$0xff]  ;;  %v2905_v32 = vcombine.low %v275_v18, %v279_v19  ;;  %v2961_v19 = vcombine.low %v331_v10, %v335_v11 }
 0x110   :  { %1866 = vmatprep.subr.bf16.mxu0 %v2850_v33  ;;  %1948 = vmatprep.subr.bf16.mxu1 %v2852_v34  ;;  %v2907_v33 = vcombine.low %v276_v20, %v280_v21  ;;  %v2914_v34 = vcombine.high %v283_v28, %v287_v29  ;;  %v2916_v35 = vcombine.high %v284_v30, %v288_v31  ;;  %v3151_v21 = vld [vmem:[#allocation8 + $0x40] sm:$0xff]  }
 0x111   :  { %1896 = vmatprep.mubr.bf16.mxu0 %v3430_v24  ;;  %1978 = vmatprep.mubr.bf16.mxu1 %v3430_v24  ;;  %v2876_v24 = vcombine.high %v244_v57, %v248_v52  ;;  %v311_v57 = vld [vmem:[#allocation5 + $0x730] sm:$0xff]  ;;  %v308_v52 = vld [vmem:[#allocation5 + $0x718] sm:$0xff] }
 0x113   :  { %1867 = vmatpush1.bf16.msra.mxu0 %v2849_v39  ;;  %1949 = vmatpush1.bf16.msra.mxu1 %v2851_v40  ;;  %v296_v39 = vld [vmem:[#allocation5 + $0x6b8] sm:$0xff]  ;;  %v2913_v40 = vcombine.low %v283_v28, %v287_v29  ;;  %v3156_v28 = vld [vmem:[#allocation8 + $0xc8] sm:$0xff]  }
 0x114   :  { %1868 = vmatprep.subr.bf16.mxu0 %v2858_v41  ;;  %1950 = vmatprep.subr.bf16.mxu1 %v2860_v42  ;;  %v2915_v41 = vcombine.low %v284_v30, %v288_v31  ;;  %v2922_v42 = vcombine.high %v291_v36, %v295_v37  ;;  %v2924_v43 = vcombine.high %v292_v38, %v296_v39  ;;  %v3157_v29 = vld [vmem:[#allocation8 + $0x8] sm:$0xff]   ;;  %v3159_v31 = vld [vmem:[#allocation8 + $0x50] sm:$0xff]  }
 0x115   :  { %v3158_v30 = vld [vmem:[#allocation8 + $0x88] sm:$0xff]  }
 0x117   :  { %1869 = vmatpush1.bf16.msra.mxu0 %v2857_v47  ;;  %1951 = vmatpush1.bf16.msra.mxu1 %v2859_v12  ;;  %v304_v47 = vld [vmem:[#allocation5 + $0x6f8] sm:$0xff]  ;;  %v2921_v12 = vcombine.low %v291_v36, %v295_v37  ;;  %v3164_v36 = vld [vmem:[#allocation8 + $0xd8] sm:$0xff]  }
 0x118   :  { %1870 = vmatprep.subr.bf16.mxu0 %v2866_v48  ;;  %1952 = vmatprep.subr.bf16.mxu1 %v2868_v49  ;;  %v2923_v48 = vcombine.low %v292_v38, %v296_v39  ;;  %v2930_v49 = vcombine.high %v299_v44, %v303_v45  ;;  %v2932_v50 = vcombine.high %v300_v46, %v304_v47  ;;  %v3165_v37 = vld [vmem:[#allocation8 + $0x18] sm:$0xff]   ;;  %v3167_v38 = vld [vmem:[#allocation8 + $0x60] sm:$0xff]  }
 0x119   :  { %v3168_v39 = vld [vmem:[#allocation8 + $0xe0] sm:$0xff]  }
 0x11b   :  { %1871 = vmatpush1.bf16.msra.mxu0 %v2865_v53  ;;  %1953 = vmatpush1.bf16.msra.mxu1 %v2867_v54  ;;  %v312_v53 = vld [vmem:[#allocation5 + $0x738] sm:$0xff]  ;;  %v2929_v54 = vcombine.low %v299_v44, %v303_v45  ;;  %v3173_v44 = vld [vmem:[#allocation8 + $0x28] sm:$0xff]  }
 0x11c   :  { %1872 = vmatprep.subr.bf16.mxu0 %v2874_v55  ;;  %1954 = vmatprep.subr.bf16.mxu1 %v2876_v24  ;;  %v2931_v55 = vcombine.low %v300_v46, %v304_v47  ;;  %v2938_v24 = vcombine.high %v307_v51, %v311_v57  ;;  %v2940_v56 = vcombine.high %v308_v52, %v312_v53  ;;  %v3174_v45 = vld [vmem:[#allocation8 + $0xa8] sm:$0xff]   ;;  %v3175_v46 = vld [vmem:[#allocation8 + $0x70] sm:$0xff]  }
 0x11d   :  { %v3176_v47 = vld [vmem:[#allocation8 + $0xf0] sm:$0xff]  }
 0x11f   :  { %1873 = vmatpush1.bf16.msra.mxu0 %v2873_v61  ;;  %1955 = vmatpush1.bf16.msra.mxu1 %v2875_v62  ;;  %v320_v61 = vld [vmem:[#allocation5 + $0x778] sm:$0xff]  ;;  %v2937_v62 = vcombine.low %v307_v51, %v311_v57  ;;  %v3181_v51 = vld [vmem:[#allocation8 + $0x38] sm:$0xff]  }
 0x120   :  { %1874 = vmatprep.subr.bf16.mxu0 %v2882_v63  ;;  %1956 = vmatprep.subr.bf16.mxu1 %v2884_v0  ;;  %v2939_v63 = vcombine.low %v308_v52, %v312_v53  ;;  %v2946_v0 = vcombine.high %v315_v58, %v319_v59  ;;  %v2948_v1 = vcombine.high %v316_v60, %v320_v61  ;;  %v3182_v57 = vld [vmem:[#allocation8 + $0xb8] sm:$0xff]   ;;  %v3183_v52 = vld [vmem:[#allocation8 + $0x140] sm:$0xff]  }
 0x121   :  { %v3184_v53 = vld [vmem:[#allocation8 + $0x1c0] sm:$0xff]  }
 0x123   :  { %1875 = vmatpush1.bf16.msra.mxu0 %v2881_v5  ;;  %1957 = vmatpush1.bf16.msra.mxu1 %v2883_v6  ;;  %v328_v5 = vld [vmem:[#allocation5 + $0x7b8] sm:$0xff]  ;;  %v2945_v6 = vcombine.low %v315_v58, %v319_v59 }
 0x124   :  { %1876 = vmatprep.subr.bf16.mxu0 %v2890_v7  ;;  %1958 = vmatprep.subr.bf16.mxu1 %v2892_v8  ;;  %v2947_v7 = vcombine.low %v316_v60, %v320_v61  ;;  %v2954_v8 = vcombine.high %v323_v2, %v327_v3  ;;  %v2956_v9 = vcombine.high %v324_v4, %v328_v5 }
 0x127   :  { %1877 = vmatpush1.bf16.msra.mxu0 %v2889_v14  ;;  %1959 = vmatpush1.bf16.msra.mxu1 %v2891_v15  ;;  %v336_v14 = vld [vmem:[#allocation5 + $0x7f8] sm:$0xff]  ;;  %v2953_v15 = vcombine.low %v323_v2, %v327_v3 }
 0x128   :  { %1878 = vmatprep.subr.bf16.mxu0 %v2898_v16  ;;  %1960 = vmatprep.subr.bf16.mxu1 %v2900_v17  ;;  %v2955_v16 = vcombine.low %v324_v4, %v328_v5  ;;  %v2962_v17 = vcombine.high %v331_v10, %v335_v11  ;;  %v2964_v18 = vcombine.high %v332_v13, %v336_v14 }
 0x129   :  { %v2963_v20 = vcombine.low %v332_v13, %v336_v14 }
 0x12b   :  { %1879 = vmatpush1.bf16.msra.mxu0 %v2897_v22  ;;  %1961 = vmatpush1.bf16.msra.mxu1 %v2899_v25  ;;  %v3152_v22 = vld [vmem:[#allocation8 + $0xc0] sm:$0xff]  }
 0x12c   :  { %1880 = vmatprep.subr.bf16.mxu0 %v2906_v26  ;;  %1962 = vmatprep.subr.bf16.mxu1 %v2908_v27  ;;  %v3153_v25 = vld [vmem:[#allocation8] sm:$0xff]   ;;  %v3155_v27 = vld [vmem:[#allocation8 + $0x48] sm:$0xff]  }
 0x12d   :  { %v3154_v26 = vld [vmem:[#allocation8 + $0x80] sm:$0xff]  }
 0x12f   :  { %1881 = vmatpush1.bf16.msra.mxu0 %v2905_v32  ;;  %1963 = vmatpush1.bf16.msra.mxu1 %v2907_v33  ;;  %v3160_v32 = vld [vmem:[#allocation8 + $0xd0] sm:$0xff]  }
 0x130   :  { %1882 = vmatprep.subr.bf16.mxu0 %v2914_v34  ;;  %1964 = vmatprep.subr.bf16.mxu1 %v2916_v35  ;;  %v3161_v33 = vld [vmem:[#allocation8 + $0x10] sm:$0xff]   ;;  %v3163_v35 = vld [vmem:[#allocation8 + $0x58] sm:$0xff]  }
 0x131   :  { %v3162_v34 = vld [vmem:[#allocation8 + $0x90] sm:$0xff]  }
 0x133   :  { %1883 = vmatpush1.bf16.msra.mxu0 %v2913_v40  ;;  %1965 = vmatpush1.bf16.msra.mxu1 %v2915_v41  ;;  %v3169_v40 = vld [vmem:[#allocation8 + $0x20] sm:$0xff]  }
 0x134   :  { %1884 = vmatprep.subr.bf16.mxu0 %v2922_v42  ;;  %1966 = vmatprep.subr.bf16.mxu1 %v2924_v43  ;;  %v3170_v41 = vld [vmem:[#allocation8 + $0xa0] sm:$0xff]   ;;  %v3171_v42 = vld [vmem:[#allocation8 + $0x68] sm:$0xff]  }
 0x135   :  { %v3172_v43 = vld [vmem:[#allocation8 + $0xe8] sm:$0xff]  }
 0x137   :  { %1885 = vmatpush1.bf16.msra.mxu0 %v2921_v12  ;;  %1967 = vmatpush1.bf16.msra.mxu1 %v2923_v48  ;;  %v3177_v12 = vld [vmem:[#allocation8 + $0x30] sm:$0xff]  }
 0x138   :  { %1886 = vmatprep.subr.bf16.mxu0 %v2930_v49  ;;  %1968 = vmatprep.subr.bf16.mxu1 %v2932_v50  ;;  %v3178_v48 = vld [vmem:[#allocation8 + $0xb0] sm:$0xff]   ;;  %v3179_v49 = vld [vmem:[#allocation8 + $0x78] sm:$0xff]  }
 0x139   :  { %v3180_v50 = vld [vmem:[#allocation8 + $0xf8] sm:$0xff]  }
 0x13b   :  { %1887 = vmatpush1.bf16.msra.mxu0 %v2929_v54  ;;  %1969 = vmatpush1.bf16.msra.mxu1 %v2931_v55  ;;  %v339_v54 = vlaneseq }
 0x13c   :  { %1888 = vmatprep.subr.bf16.mxu0 %v2938_v24  ;;  %1970 = vmatprep.subr.bf16.mxu1 %v2940_v56  ;;  %v3451_v56 = vld [vmem:[#allocation7] sm:$0xff] }
 0x13d   :  { %v3448_v55 = vshrl.u32 %v339_v54, 7 }
 0x13f   :  { %1889 = vmatpush1.bf16.msra.mxu0 %v2937_v62  ;;  %1971 = vmatpush1.bf16.msra.mxu1 %v2939_v63  ;;  %v341_v24 = vsub.s32 0, %v3448_v55  ;;  %v349_v58 = vsub.s32 2, %v3448_v55  ;;  %v345_v59 = vsub.s32 1, %v3448_v55  ;;  %v353_v60 = vsub.s32 3, %v3448_v55 }
 0x140   :  { %1890 = vmatprep.subr.bf16.mxu0 %v2946_v0  ;;  %1972 = vmatprep.subr.bf16.mxu1 %v2948_v1  ;;  %v369_v54 = vsub.s32 7, %v3448_v55 }
 0x141   :  { %v342_v61 = vrot.slane %v3451_v56, %v341_v24  ;;  %v350_v62 = vrot.slane %v3451_v56, %v349_v58  ;;  %v346_v63 = vrot.slane %v3451_v56, %v345_v59  ;;  %v354_v0 = vrot.slane %v3451_v56, %v353_v60 }
 0x142   :  { %v370_v60 = vrot.slane %v3451_v56, %v369_v54 }
 0x143   :  { %1891 = vmatpush1.bf16.msra.mxu0 %v2945_v6  ;;  %1973 = vmatpush1.bf16.msra.mxu1 %v2947_v7 }
 0x144   :  { %1892 = vmatprep.subr.bf16.mxu0 %v2954_v8  ;;  %1974 = vmatprep.subr.bf16.mxu1 %v2956_v9 }
 0x147   :  { %1893 = vmatpush1.bf16.msra.mxu0 %v2953_v15  ;;  %1975 = vmatpush1.bf16.msra.mxu1 %v2955_v16 }
 0x148   :  { %1894 = vmatprep.subr.bf16.mxu0 %v2962_v17  ;;  %1976 = vmatprep.subr.bf16.mxu1 %v2964_v18 }
 0x14b   :  { %1895 = vmatpush1.bf16.msra.mxu0 %v2961_v19  ;;  %1977 = vmatpush1.bf16.msra.mxu1 %v2963_v20  ;;  %v3185_v19 = vld [vmem:[#allocation8 + $0x100] sm:$0xff]  }
 0x14c   :  { %3030 = vmatprep.subr.bf16.mxu0 %v3151_v21  ;;  %3052 = vmatprep.subr.bf16.mxu1 %v3152_v22  ;;  %v3186_v22 = vld [vmem:[#allocation8 + $0x180] sm:$0xff]  }
 0x14e   :  { %1897 = vmatmul.mubr.bf16.vlgmr.msra.gmra.mrb[4].mxu0 %v3436_v23  ;;  %1979 = vmatmul.mubr.bf16.vlgmr.msra.gmra.mrb[4].mxu1 %v3436_v23  ;;  %v3166_v23 = vld [vmem:[#allocation8 + $0x98] sm:$0xff]  }
 0x14f   :  { %3031 = vmatpush3.bf16.msra.mxu0 %v3153_v25  ;;  %3053 = vmatpush3.bf16.msra.mxu1 %v3154_v26  ;;  %v3187_v25 = vld [vmem:[#allocation8 + $0x148] sm:$0xff]  }
 0x150   :  { %3032 = vmatprep.subr.bf16.mxu0 %v3155_v27  ;;  %3054 = vmatprep.subr.bf16.mxu1 %v3156_v28  ;;  %v3188_v27 = vld [vmem:[#allocation8 + $0x1c8] sm:$0xff]  }
 0x151   :  { %v3189_v28 = vld [vmem:[#allocation8 + $0x108] sm:$0xff]  }
 0x153   :  { %3033 = vmatpush3.bf16.msra.mxu0 %v3157_v29  ;;  %3055 = vmatpush3.bf16.msra.mxu1 %v3158_v30  ;;  %v3190_v29 = vld [vmem:[#allocation8 + $0x188] sm:$0xff]   ;;  %v3191_v30 = vld [vmem:[#allocation8 + $0x150] sm:$0xff]  }
 0x154   :  { %3034 = vmatprep.subr.bf16.mxu0 %v3159_v31  ;;  %3056 = vmatprep.subr.bf16.mxu1 %v3160_v32  ;;  %v3192_v31 = vld [vmem:[#allocation8 + $0x1d0] sm:$0xff]  }
 0x155   :  { %v3193_v32 = vld [vmem:[#allocation8 + $0x110] sm:$0xff]  }
 0x157   :  { %3035 = vmatpush3.bf16.msra.mxu0 %v3161_v33  ;;  %3057 = vmatpush3.bf16.msra.mxu1 %v3162_v34  ;;  %v3194_v33 = vld [vmem:[#allocation8 + $0x190] sm:$0xff]   ;;  %v3195_v34 = vld [vmem:[#allocation8 + $0x158] sm:$0xff]  }
 0x158   :  { %3036 = vmatprep.subr.bf16.mxu0 %v3163_v35  ;;  %3058 = vmatprep.subr.bf16.mxu1 %v3164_v36  ;;  %v3196_v35 = vld [vmem:[#allocation8 + $0x1d8] sm:$0xff]  }
 0x159   :  { %v3197_v36 = vld [vmem:[#allocation8 + $0x118] sm:$0xff]  }
 0x15b   :  { %3037 = vmatpush3.bf16.msra.mxu0 %v3165_v37  ;;  %3059 = vmatpush3.bf16.msra.mxu1 %v3166_v23  ;;  %v3198_v37 = vld [vmem:[#allocation8 + $0x198] sm:$0xff]   ;;  %v3199_v23 = vld [vmem:[#allocation8 + $0x160] sm:$0xff]  }
 0x15c   :  { %3038 = vmatprep.subr.bf16.mxu0 %v3167_v38  ;;  %3060 = vmatprep.subr.bf16.mxu1 %v3168_v39  ;;  %v3200_v38 = vld [vmem:[#allocation8 + $0x1e0] sm:$0xff]  }
 0x15d   :  { %v3201_v39 = vld [vmem:[#allocation8 + $0x120] sm:$0xff]  }
 0x15f   :  { %3039 = vmatpush3.bf16.msra.mxu0 %v3169_v40  ;;  %3061 = vmatpush3.bf16.msra.mxu1 %v3170_v41  ;;  %v3202_v40 = vld [vmem:[#allocation8 + $0x1a0] sm:$0xff]   ;;  %v3203_v41 = vld [vmem:[#allocation8 + $0x168] sm:$0xff]  }
 0x160   :  { %3040 = vmatprep.subr.bf16.mxu0 %v3171_v42  ;;  %3062 = vmatprep.subr.bf16.mxu1 %v3172_v43  ;;  %v3204_v42 = vld [vmem:[#allocation8 + $0x1e8] sm:$0xff]  }
 0x161   :  { %v3205_v43 = vld [vmem:[#allocation8 + $0x128] sm:$0xff]  }
 0x163   :  { %3041 = vmatpush3.bf16.msra.mxu0 %v3173_v44  ;;  %3063 = vmatpush3.bf16.msra.mxu1 %v3174_v45  ;;  %v3206_v44 = vld [vmem:[#allocation8 + $0x1a8] sm:$0xff]   ;;  %v3207_v45 = vld [vmem:[#allocation8 + $0x170] sm:$0xff]  }
 0x164   :  { %3042 = vmatprep.subr.bf16.mxu0 %v3175_v46  ;;  %3064 = vmatprep.subr.bf16.mxu1 %v3176_v47  ;;  %v3208_v46 = vld [vmem:[#allocation8 + $0x1f0] sm:$0xff]  }
 0x165   :  { %v3209_v47 = vld [vmem:[#allocation8 + $0x130] sm:$0xff]  }
 0x167   :  { %3043 = vmatpush3.bf16.msra.mxu0 %v3177_v12  ;;  %3065 = vmatpush3.bf16.msra.mxu1 %v3178_v48  ;;  %v3210_v12 = vld [vmem:[#allocation8 + $0x1b0] sm:$0xff]   ;;  %v3211_v48 = vld [vmem:[#allocation8 + $0x178] sm:$0xff]  }
 0x168   :  { %3044 = vmatprep.subr.bf16.mxu0 %v3179_v49  ;;  %3066 = vmatprep.subr.bf16.mxu1 %v3180_v50  ;;  %v3212_v49 = vld [vmem:[#allocation8 + $0x1f8] sm:$0xff]  }
 0x169   :  { %v3213_v50 = vld [vmem:[#allocation8 + $0x138] sm:$0xff]  }
 0x16b   :  { %3045 = vmatpush3.bf16.msra.mxu0 %v3181_v51  ;;  %3067 = vmatpush3.bf16.msra.mxu1 %v3182_v57  ;;  %v3214_v51 = vld [vmem:[#allocation8 + $0x1b8] sm:$0xff]   ;;  %v357_v57 = vsub.s32 4, %v3448_v55 }
 0x16c   :  { %3074 = vmatprep.subr.bf16.mxu0 %v3183_v52  ;;  %3096 = vmatprep.subr.bf16.mxu1 %v3184_v53  ;;  %v365_v52 = vsub.s32 6, %v3448_v55  ;;  %v361_v53 = vsub.s32 5, %v3448_v55 }
 0x16d   :  { %v358_v24 = vrot.slane %v3451_v56, %v357_v57 }
 0x16e   :  { %v366_v58 = vrot.slane %v3451_v56, %v365_v52  ;;  %v362_v59 = vrot.slane %v3451_v56, %v361_v53 }
 0x1a1   :  { %v1734_v1 = vpop.f32.mrb[0].mxu0  ;;  %v1816_v3 = vpop.f32.mrb[0].mxu1 }
 0x1a2   :  { %v3118_v2 = vadd.f32 %v1734_v1, %v342_v61  ;;  %v1736_v4 = vpop.f32.mrb[1].mxu0  ;;  %v3120_v5 = vadd.f32 %v1816_v3, %v350_v62  ;;  %v1818_v7 = vpop.f32.mrb[1].mxu1 }
 0x1a3   :  { %v3119_v6 = vadd.f32 %v1736_v4, %v346_v63  ;;  %v1738_v8 = vpop.f32.mrb[2].mxu0  ;;  %v3121_v10 = vadd.f32 %v1818_v7, %v354_v0  ;;  %v1820_v11 = vpop.f32.mrb[2].mxu1 }
 0x1a4   :  { %v1987_v9 = vmax.f32 %v3118_v2, 0.0  ;;  %v1739_v13 = vpop.f32.mrb[3].mxu0  ;;  %v1989_v14 = vmax.f32 %v3120_v5, 0.0  ;;  %v1821_v16 = vpop.f32.mrb[3].mxu1 }
 0x1a5   :  { %v1988_v15 = vmax.f32 %v3119_v6, 0.0  ;;  %v1990_v17 = vmax.f32 %v3121_v10, 0.0 }
 0x1a6   :  { %v1995_v20 = vpack.c.bf16 %v1987_v9, %v1987_v9  ;;  %v1997_v26 = vpack.c.bf16 %v1989_v14, %v1989_v14 }
 0x1a7   :  { %v1996_v18 = vpack.c.bf16 %v1988_v15, %v1988_v15  ;;  %v1998_v21 = vpack.c.bf16 %v1990_v17, %v1990_v17 }
 0x1a9   :  { %2554 = vmatprep.mubr.bf16.mxu0 %v1996_v18  ;;  %2594 = vmatprep.mubr.bf16.mxu1 %v1998_v21  ;;  %v2965_v18 = vld [vmem:[%s3487_s4] ss:$0 sm:$0xff]  ;;  %s3345_s4 = smov [#allocation10]  }
 0x1aa   :  { %2555 = vmatmul.mubr.bf16.vlgmr.msra.gmra.mrb[8].mxu0 %v1995_v20  ;;  %2595 = vmatmul.mubr.bf16.vlgmr.msra.gmra.mrb[8].mxu1 %v1997_v26  ;;  %s2698_s1 = sshll.u32 %s3345_s4, 4  ;;  %s2699_s1 = int_to_ptr.vmem [resolvable:$true] %s2698_s1 }
 0x1ab   :  { %3075 = vmatpush3.bf16.msra.mxu0 %v3185_v19  ;;  %3097 = vmatpush3.bf16.msra.mxu1 %v3186_v22  ;;  %s3307_s18 = scalar_lea.vmem %s2699_s1, 128  ;;  %p3312_p5 = scmp.lt.s32.totalorder %s2699_s1, %s2699_s1 }
 0x1ac   :  { %3076 = vmatprep.subr.bf16.mxu0 %v3187_v25  ;;  %3098 = vmatprep.subr.bf16.mxu1 %v3188_v27  ;;  %p3308_p4 = scmp.ne.s32.totalorder %s2699_s1, %s3307_s18  ;;  %p3313_p6 = scmp.lt.s32.totalorder %s3307_s18, %s3307_s18 }
 0x1ae   :  { %p3314_p7 = por %p3313_p6, %p3312_p5 }
 0x1af   :  { %3077 = vmatpush3.bf16.msra.mxu0 %v3189_v28  ;;  %3099 = vmatpush3.bf16.msra.mxu1 %v3190_v29 }
 0x1b0   :  { %3078 = vmatprep.subr.bf16.mxu0 %v3191_v30  ;;  %3100 = vmatprep.subr.bf16.mxu1 %v3192_v31  ;;  %p3315_p8 = pnand %p3314_p7, %p3308_p4 }
 0x1b3   :  { %3079 = vmatpush3.bf16.msra.mxu0 %v3193_v32  ;;  %3101 = vmatpush3.bf16.msra.mxu1 %v3194_v33 }
 0x1b4   :  { %3080 = vmatprep.subr.bf16.mxu0 %v3195_v34  ;;  %3102 = vmatprep.subr.bf16.mxu1 %v3196_v35 }
 0x1b7   :  { %3081 = vmatpush3.bf16.msra.mxu0 %v3197_v36  ;;  %3103 = vmatpush3.bf16.msra.mxu1 %v3198_v37 }
 0x1b8   :  { %3082 = vmatprep.subr.bf16.mxu0 %v3199_v23  ;;  %3104 = vmatprep.subr.bf16.mxu1 %v3200_v38 }
 0x1bb   :  { %3083 = vmatpush3.bf16.msra.mxu0 %v3201_v39  ;;  %3105 = vmatpush3.bf16.msra.mxu1 %v3202_v40 }
 0x1bc   :  { %3084 = vmatprep.subr.bf16.mxu0 %v3203_v41  ;;  %3106 = vmatprep.subr.bf16.mxu1 %v3204_v42 }
 0x1bf   :  { %3085 = vmatpush3.bf16.msra.mxu0 %v3205_v43  ;;  %3107 = vmatpush3.bf16.msra.mxu1 %v3206_v44 }
 0x1c0   :  { %3086 = vmatprep.subr.bf16.mxu0 %v3207_v45  ;;  %3108 = vmatprep.subr.bf16.mxu1 %v3208_v46 }
 0x1c3   :  { %3087 = vmatpush3.bf16.msra.mxu0 %v3209_v47  ;;  %3109 = vmatpush3.bf16.msra.mxu1 %v3210_v12 }
 0x1c4   :  { %3088 = vmatprep.subr.bf16.mxu0 %v3211_v48  ;;  %3110 = vmatprep.subr.bf16.mxu1 %v3212_v49 }
 0x1c7   :  { %3089 = vmatpush3.bf16.msra.mxu0 %v3213_v50  ;;  %3111 = vmatpush3.bf16.msra.mxu1 %v3214_v51 }
 0x221   :  { %v1898_v61 = vpop.f32.mrb[4].mxu0  ;;  %v1980_v63 = vpop.f32.mrb[4].mxu1 }
 0x222   :  { %v3122_v62 = vadd.f32 %v1898_v61, %v358_v24  ;;  %v1900_v0 = vpop.f32.mrb[5].mxu0  ;;  %v3124_v1 = vadd.f32 %v1980_v63, %v366_v58  ;;  %v1982_v3 = vpop.f32.mrb[5].mxu1 }
 0x223   :  { %v3123_v2 = vadd.f32 %v1900_v0, %v362_v59  ;;  %v1902_v4 = vpop.f32.mrb[6].mxu0  ;;  %v3125_v6 = vadd.f32 %v1982_v3, %v370_v60  ;;  %v1984_v7 = vpop.f32.mrb[6].mxu1 }
 0x224   :  { %v1991_v5 = vmax.f32 %v3122_v62, 0.0  ;;  %v1903_v55 = vpop.f32.mrb[7].mxu0  ;;  %v1993_v8 = vmax.f32 %v3124_v1, 0.0  ;;  %v1985_v10 = vpop.f32.mrb[7].mxu1 }
 0x225   :  { %v1992_v9 = vmax.f32 %v3123_v2, 0.0  ;;  %v1994_v11 = vmax.f32 %v3125_v6, 0.0 }
 0x226   :  { %v1999_v14 = vpack.c.bf16 %v1991_v5, %v1991_v5  ;;  %v2001_v56 = vpack.c.bf16 %v1993_v8, %v1993_v8 }
 0x227   :  { %v2000_v13 = vpack.c.bf16 %v1992_v9, %v1992_v9  ;;  %v2002_v15 = vpack.c.bf16 %v1994_v11, %v1994_v11 }
 0x229   :  { %2634 = vmatprep.mubr.bf16.mxu0 %v2000_v13  ;;  %2674 = vmatprep.mubr.bf16.mxu1 %v2002_v15 }
 0x22a   :  { %2635 = vmatmul.mubr.bf16.vlgmr.msra.gmra.mrb[12].mxu0 %v1999_v14  ;;  %2675 = vmatmul.mubr.bf16.vlgmr.msra.gmra.mrb[12].mxu1 %v2001_v56 }
 0x27d   :  { %v3046_v16 = vpop.f32.mrb[8].mxu0  ;;  %v3068_v17 = vpop.f32.mrb[8].mxu1 }
 0x27e   :  { %v3047_v19 = vpop.f32.mrb[9].mxu0  ;;  %v3069_v21 = vpop.f32.mrb[9].mxu1 }
 0x27f   :  { %v3048_v20 = vadd.f32 %v3047_v19, %v3046_v16  ;;  %v3049_v22 = vpop.f32.mrb[10].mxu0  ;;  %v3070_v25 = vadd.f32 %v3069_v21, %v3068_v17  ;;  %v3071_v26 = vpop.f32.mrb[10].mxu1 }
 0x280   :  { %v3050_v27 = vpop.f32.mrb[11].mxu0  ;;  %v3072_v29 = vpop.f32.mrb[11].mxu1 }
 0x281   :  { %v2557_v28 = vadd.f32 %v3048_v20, %v2965_v18 }
 0x283   :  { %v2597_v30 = vadd.f32 %v3070_v25, %v2557_v28 }
 0x2fd   :  { %v3090_v31 = vpop.f32.mrb[12].mxu0  ;;  %v3112_v32 = vpop.f32.mrb[12].mxu1 }
 0x2fe   :  { %v3091_v33 = vpop.f32.mrb[13].mxu0  ;;  %v3113_v35 = vpop.f32.mrb[13].mxu1 }
 0x2ff   :  { %v3092_v34 = vadd.f32 %v3091_v33, %v3090_v31  ;;  %v3093_v36 = vpop.f32.mrb[14].mxu0  ;;  %v3114_v37 = vadd.f32 %v3113_v35, %v3112_v32  ;;  %v3115_v23 = vpop.f32.mrb[14].mxu1 }
 0x300   :  { %v3094_v38 = vpop.f32.mrb[15].mxu0  ;;  %v3116_v40 = vpop.f32.mrb[15].mxu1 }
 0x301   :  { %v2637_v39 = vadd.f32 %v3092_v34, %v2597_v30 }
 0x303   :  { %v2677_v41 = vadd.f32 %v3114_v37, %v2637_v39 }
 0x305   :  { %2682 = vmax.xlane.f32.xlu0 %v2677_v41 }
 0x392   :  { %v2683_v42 = vpop.xlane.xlu0 %2682 }
 0x393   :  { %v2684_v43 = vsub.f32 %v2677_v41, %v2683_v42 }
 0x395   :  { %v2685_v44 = vmul.f32 1.442695, %v2684_v43 }
 0x397   :  { %3215 = vpow2.f32 %v2685_v44 }
 0x3a1   :  { %v3216_v45 = vpop.eup %3215 }
 0x3a2   :  { %2687 = vadd.xlane.f32.xlu0 %v3216_v45 }
 0x42f   :  { %v2688_v46 = vpop.xlane.xlu0 %2687 }
 0x430   :  { %3217 = vrcp.f32 %v2688_v46 }
 0x43a   :  { %v3218_v47 = vpop.eup %3217 }
 0x43b   :  { %v2690_v12 = vmul.f32 %v3218_v47, %v3216_v45 }
 0x43d   :  { %2691 = vst [vmem:[#allocation10] sm:$0xff] %v2690_v12 }
 0x43e   :  { %3318 = shalt.err (!%p3315_p8)
}
 0x43f   :  { %s3319_s21 = scalar_lea.hbm %s3488_s5, 128 }
 0x440   :  { %p3320_p9 = scmp.ne.s32.totalorder %s3488_s5, %s3319_s21  ;;  %p3323_p10 = scmp.lt.u32.totalorder %s3319_s21, %s3488_s5 }
 0x442   :  { %p3325_p11 = pnand %p3323_p10, %p3320_p9 }
 0x444   :  { %3328 = shalt.err (!%p3325_p11)
}
 0x445   :  { %2701 = dma.vmem_to_hbm [thread:$0]  %s2699_s1, 128, %s3488_s5, [#allocation4]  }
 0x446   :  { %3335 = dma.done.wait [#allocation4], 128  }
 0x447   :  { %3336 = vsyncadd [#allocation4], 4294967168 }
 0x448   :  { %2705 = vsyncpa [#allocation3], 1 }
 0x449   :  { %2706 = vsyncpa [#allocation6], 1 }
 0x44a   :  { %2707 = vsyncpa [#allocation9], 1 }
 0x44b   :  { %2708 = vsyncpa [#allocation4], 1 }

</bundles_post_ra>
